<compile_context>
chip_gen: v6e
topology: v6e:2x2x1
jax: 0.10.0
libtpu: 0.0.40
codegen_flags: <defaults>
</compile_context>

<pallas_src>
import functools
import numpy as np

import jax
import jax.numpy as jnp
from jax.experimental import pallas as pl
from jax.experimental.pallas import tpu as pltpu

LN_EPS = 1e-5  # nn.LayerNorm default


# ----------------------------- Pallas kernels -----------------------------

def _attn_block_kernel(x_ref, g_ref, b_ref, wqkv_ref, bqkv_ref,
                       wproj_ref, bproj_ref, bias_ref, o_ref,
                       *, num_heads, head_dim, scale):
    """Fused LayerNorm + window attention for a block of Wb windows."""
    Wb, N, C = x_ref.shape
    x = x_ref[...].reshape(Wb * N, C)

    # --- fused norm1 (per-token; commutes with window_partition) ---
    mu = jnp.mean(x, axis=-1, keepdims=True)
    var = jnp.mean((x - mu) ** 2, axis=-1, keepdims=True)
    xn = (x - mu) * jax.lax.rsqrt(var + LN_EPS) * g_ref[...] + b_ref[...]

    # --- single batched QKV projection for the whole window block ---
    qkv = jnp.dot(xn, wqkv_ref[...],
                  preferred_element_type=jnp.float32) + bqkv_ref[...]   # (Wb*N, 3C)
    q = qkv[:, :C]
    k = qkv[:, C:2 * C]
    v = qkv[:, 2 * C:]

    def split_heads(t):
        # (Wb*N, C) -> (num_heads*Wb, N, head_dim); batch index b = h*Wb + w.
        parts = [t[:, h * head_dim:(h + 1) * head_dim] for h in range(num_heads)]
        return jnp.stack(parts, axis=0).reshape(num_heads * Wb, N, head_dim)

    qh = split_heads(q) * scale
    kh = split_heads(k)
    vh = split_heads(v)

    # --- batched attention over (head, window) ---
    logits = jnp.einsum('bnd,bmd->bnm', qh, kh,
                        preferred_element_type=jnp.float32)             # (H*Wb, N, N)
    logits = (logits.reshape(num_heads, Wb, N, N)
              + bias_ref[...][:, None, :, :]).reshape(num_heads * Wb, N, N)
    logits = logits - jnp.max(logits, axis=-1, keepdims=True)
    p = jnp.exp(logits)
    # EUP reciprocal instead of a VALU divide (free slot).
    p = p * pl.reciprocal(jnp.sum(p, axis=-1, keepdims=True), approx=True)
    out = jnp.einsum('bnm,bmd->bnd', p, vh,
                     preferred_element_type=jnp.float32)                # (H*Wb, N, d)

    # --- merge heads back to (Wb*N, C); matches torch transpose(1,2).reshape ---
    out = out.reshape(num_heads, Wb * N, head_dim)
    merged = jnp.concatenate([out[h] for h in range(num_heads)], axis=-1)

    proj = jnp.dot(merged, wproj_ref[...],
                   preferred_element_type=jnp.float32) + bproj_ref[...]
    o_ref[...] = proj.reshape(Wb, N, C).astype(o_ref.dtype)


def _add_norm_mlp_kernel(sc_ref, attn_ref, g_ref, b_ref,
                         w1_ref, b1_ref, w2_ref, b2_ref, o_ref):
    """Fused: y = 2*shortcut + attn; out = y + MLP(LN(y))  (norm1 reused, per spec)."""
    y = sc_ref[...] * 2.0 + attn_ref[...]
    mu = jnp.mean(y, axis=-1, keepdims=True)
    var = jnp.mean((y - mu) ** 2, axis=-1, keepdims=True)
    ln = (y - mu) * jax.lax.rsqrt(var + LN_EPS) * g_ref[...] + b_ref[...]
    h = jnp.dot(ln, w1_ref[...], preferred_element_type=jnp.float32) + b1_ref[...]
    # exact GELU (PyTorch nn.GELU default, erf based)
    h = 0.5 * h * (1.0 + jax.lax.erf(h * 0.7071067811865476))
    m = jnp.dot(h, w2_ref[...], preferred_element_type=jnp.float32) + b2_ref[...]
    o_ref[...] = (y + m).astype(o_ref.dtype)


# ----------------------------- tile pickers -----------------------------

def _pick_window_block(nW, N, target_rows=1024):
    """Windows per grid step: big enough to feed the MXU, >=2 grid steps when possible."""
    wb = max(1, min(nW, target_rows // max(N, 1)))
    if nW >= 2:
        wb = min(wb, max(1, nW // 2))     # keep >=2 grid steps (v7x has 2 TCs)
    while nW % wb != 0:
        wb -= 1
    return wb


def _pick_row_tile(M, cap=512):
    """Row tile for the fused add/norm/MLP kernel (multiple of 8, divides M)."""
    if M % 8 != 0:
        return M                           # fallback: single block
    t = min(cap, M)                        # cap keeps VMEM well under v7x's 64 MiB budget
    if M >= 16:
        t = min(t, M // 2)                 # >=2 grid steps when possible (v7x: 2 TCs)
    t = max(8, (t // 8) * 8)
    while M % t != 0:
        t -= 8
    return t


# ----------------------------- Pallas wrappers -----------------------------

def window_attention_block(x_windows, norm_g, norm_b, wqkv, bqkv, wproj, bproj,
                           rel_bias, *, num_heads, scale):
    nW, N, C = x_windows.shape
    head_dim = C // num_heads
    Wb = _pick_window_block(nW, N)
    kern = functools.partial(_attn_block_kernel, num_heads=num_heads,
                             head_dim=head_dim, scale=scale)
    return pl.pallas_call(
        kern,
        out_shape=jax.ShapeDtypeStruct((nW, N, C), x_windows.dtype),
        grid=(nW // Wb,),
        in_specs=[
            pl.BlockSpec((Wb, N, C), lambda w: (w, 0, 0)),
            pl.BlockSpec((1, C), lambda w: (0, 0)),
            pl.BlockSpec((1, C), lambda w: (0, 0)),
            pl.BlockSpec((C, 3 * C), lambda w: (0, 0)),
            pl.BlockSpec((1, 3 * C), lambda w: (0, 0)),
            pl.BlockSpec((C, C), lambda w: (0, 0)),
            pl.BlockSpec((1, C), lambda w: (0, 0)),
            pl.BlockSpec((num_heads, N, N), lambda w: (0, 0, 0)),
        ],
        out_specs=pl.BlockSpec((Wb, N, C), lambda w: (w, 0, 0)),
        compiler_params=pltpu.CompilerParams(dimension_semantics=("parallel",)),
    )(x_windows, norm_g.reshape(1, C), norm_b.reshape(1, C),
      wqkv, bqkv.reshape(1, 3 * C), wproj, bproj.reshape(1, C), rel_bias)


def add_norm_mlp(shortcut2d, attn2d, norm_g, norm_b, w1, b1, w2, b2):
    M, C = shortcut2d.shape
    Hd = w1.shape[1]
    TM = _pick_row_tile(M)
    return pl.pallas_call(
        _add_norm_mlp_kernel,
        out_shape=jax.ShapeDtypeStruct((M, C), shortcut2d.dtype),
        grid=(M // TM,),
        in_specs=[pl.BlockSpec((TM, C), lambda i: (i, 0)),
                  pl.BlockSpec((TM, C), lambda i: (i, 0)),
                  pl.BlockSpec((1, C), lambda i: (0, 0)),
                  pl.BlockSpec((1, C), lambda i: (0, 0)),
                  pl.BlockSpec((C, Hd), lambda i: (0, 0)),
                  pl.BlockSpec((1, Hd), lambda i: (0, 0)),
                  pl.BlockSpec((Hd, C), lambda i: (0, 0)),
                  pl.BlockSpec((1, C), lambda i: (0, 0))],
        out_specs=pl.BlockSpec((TM, C), lambda i: (i, 0)),
        compiler_params=pltpu.CompilerParams(dimension_semantics=("parallel",)),
    )(shortcut2d, attn2d, norm_g.reshape(1, C), norm_b.reshape(1, C),
      w1, b1.reshape(1, Hd), w2, b2.reshape(1, C))


# ------------------------------- JAX glue ----------------------------------

def window_partition(x, ws):
    B, H, W, C = x.shape
    x = x.reshape(B, H // ws, ws, W // ws, ws, C)
    return x.transpose(0, 1, 3, 2, 4, 5).reshape(-1, ws, ws, C)


def window_reverse(windows, ws, H, W):
    B = windows.shape[0] // (H * W // ws // ws)
    x = windows.reshape(B, H // ws, W // ws, ws, ws, -1)
    return x.transpose(0, 1, 3, 2, 4, 5).reshape(B, H, W, -1)


def relative_position_index(ws):
    coords = np.stack(np.meshgrid(np.arange(ws), np.arange(ws), indexing="ij"))
    coords_flatten = coords.reshape(2, -1)
    rel = coords_flatten[:, :, None] - coords_flatten[:, None, :]
    rel = rel.transpose(1, 2, 0).copy()
    rel[:, :, 0] += ws - 1
    rel[:, :, 1] += ws - 1
    rel[:, :, 0] *= 2 * ws - 1
    return rel.sum(-1)  # (N, N)


def init_params(key, dim, num_heads, window_size, mlp_ratio):
    hidden = int(dim * mlp_ratio)
    ws = window_size
    ks = jax.random.split(key, 5)
    std = 0.02
    return {
        "norm1_g": jnp.ones((dim,), jnp.float32),
        "norm1_b": jnp.zeros((dim,), jnp.float32),
        "wqkv": std * jax.random.normal(ks[0], (dim, 3 * dim), jnp.float32),
        "bqkv": jnp.zeros((3 * dim,), jnp.float32),
        "wproj": std * jax.random.normal(ks[1], (dim, dim), jnp.float32),
        "bproj": jnp.zeros((dim,), jnp.float32),
        # trunc_normal_(std=0.02) approximated by plain normal (synthetic weights)
        "rel_bias_table": std * jax.random.normal(
            ks[2], ((2 * ws - 1) * (2 * ws - 1), num_heads), jnp.float32),
        "w1": std * jax.random.normal(ks[3], (dim, hidden), jnp.float32),
        "b1": jnp.zeros((hidden,), jnp.float32),
        "w2": std * jax.random.normal(ks[4], (hidden, dim), jnp.float32),
        "b2": jnp.zeros((dim,), jnp.float32),
    }


def conv_former_decoder_block(x, params, *, input_resolution, num_heads,
                              window_size):
    # shift_size = 0 (no cyclic shift / no attn mask), drop_path = Identity.
    H, W = input_resolution
    B, L, C = x.shape
    assert L == H * W, "input feature has wrong size"
    assert H % window_size == 0 and W % window_size == 0, \
        "H, W must be divisible by window_size (shift_size=0 path)"
    ws = window_size
    N = ws * ws
    head_dim = C // num_heads
    scale = head_dim ** (-0.5)

    shortcut = x

    # window partition of the RAW input (norm1 is fused inside the attn kernel)
    xw = window_partition(x.reshape(B, H, W, C), ws).reshape(-1, N, C)

    # relative position bias gather (glue): (num_heads, N, N)
    rel_idx = relative_position_index(ws)
    rel_bias = params["rel_bias_table"][rel_idx.reshape(-1)].reshape(
        N, N, num_heads).transpose(2, 0, 1)

    # kernel 1: fused LN + window attention, many windows per grid step
    attn_w = window_attention_block(
        xw, params["norm1_g"], params["norm1_b"],
        params["wqkv"], params["bqkv"], params["wproj"], params["bproj"],
        rel_bias, num_heads=num_heads, scale=scale)

    attn_full = window_reverse(attn_w.reshape(-1, ws, ws, C), ws, H, W)
    attn_full = attn_full.reshape(B * L, C)

    # kernel 2: fused (2*shortcut + attn) -> norm1 -> MLP -> residual
    out = add_norm_mlp(shortcut.reshape(B * L, C), attn_full,
                       params["norm1_g"], params["norm1_b"],
                       params["w1"], params["b1"], params["w2"], params["b2"])
    return out.reshape(B, L, C)


# --------------------------- pure-JAX reference -----------------------------

def _reference(x, params, *, input_resolution, num_heads, window_size):
    H, W = input_resolution
    B, L, C = x.shape
    ws = window_size
    N = ws * ws
    hd = C // num_heads
    scale = hd ** (-0.5)

    def ln(v, g, b):
        mu = v.mean(-1, keepdims=True)
        var = ((v - mu) ** 2).mean(-1, keepdims=True)
        return (v - mu) / jnp.sqrt(var + LN_EPS) * g + b

    xn = ln(x, params["norm1_g"], params["norm1_b"])
    xw = window_partition(xn.reshape(B, H, W, C), ws).reshape(-1, N, C)
    qkv = xw @ params["wqkv"] + params["bqkv"]
    qkv = qkv.reshape(-1, N, 3, num_heads, hd).transpose(2, 0, 3, 1, 4)
    q, k, v = qkv[0] * scale, qkv[1], qkv[2]
    attn = q @ jnp.swapaxes(k, -2, -1)
    rel_idx = relative_position_index(ws)
    bias = params["rel_bias_table"][rel_idx.reshape(-1)].reshape(
        N, N, num_heads).transpose(2, 0, 1)
    attn = jax.nn.softmax(attn + bias[None], axis=-1)
    o = (attn @ v).transpose(0, 2, 1, 3).reshape(-1, N, C)
    o = o @ params["wproj"] + params["bproj"]
    o = window_reverse(o.reshape(-1, ws, ws, C), ws, H, W).reshape(B, L, C)
    y = 2.0 * x + o
    lny = ln(y, params["norm1_g"], params["norm1_b"])
    h = lny @ params["w1"] + params["b1"]
    h = 0.5 * h * (1.0 + jax.lax.erf(h * 0.7071067811865476))
    return y + h @ params["w2"] + params["b2"]


# --------------------------------- main -------------------------------------

if __name__ == "__main__":
    B = 2
    H, W = 8, 8
    C = 32
    num_heads = 4
    window_size = 4
    mlp_ratio = 4.0

    key = jax.random.PRNGKey(0)
    kx, kp = jax.random.split(key)
    x = jax.random.normal(kx, (B, H * W, C), jnp.float32)
    params = init_params(kp, C, num_heads, window_size, mlp_ratio)

    out = conv_former_decoder_block(
        x, params, input_resolution=(H, W), num_heads=num_heads,
        window_size=window_size)
    jax.block_until_ready(out)
    assert out.shape == (B, H * W, C)

    ref = _reference(x, params, input_resolution=(H, W), num_heads=num_heads,
                     window_size=window_size)
    err = float(jnp.max(jnp.abs(out - ref)))
    assert err < 2e-2, f"mismatch vs reference: max abs err = {err}"

    print("KERNEL_OK")
</pallas_src>

<mosaic_0001>
module attributes {stable_mosaic.version = 11 : i64} {
  func.func @_attn_block_kernel(%arg0: i32, %arg1: memref<4x16x32xf32, #tpu.memory_space<vmem>>, %arg2: memref<1x32xf32, #tpu.memory_space<vmem>>, %arg3: memref<1x32xf32, #tpu.memory_space<vmem>>, %arg4: memref<32x96xf32, #tpu.memory_space<vmem>>, %arg5: memref<1x96xf32, #tpu.memory_space<vmem>>, %arg6: memref<32x32xf32, #tpu.memory_space<vmem>>, %arg7: memref<1x32xf32, #tpu.memory_space<vmem>>, %arg8: memref<4x16x16xf32, #tpu.memory_space<vmem>>, %arg9: memref<4x16x32xf32, #tpu.memory_space<vmem>>) attributes {dimension_semantics = [#tpu.dimension_semantics<parallel>], iteration_bounds = array<i64: 2>, scalar_prefetch = 0 : i64, scratch_operands = 0 : i64, tpu.core_type = #tpu.core_type<tc>, window_params = [{transform_indices = @transform_0, window_bounds = array<i64: 4, 16, 32>}, {pipeline_mode = #tpu.pipeline_mode<synchronous>, transform_indices = @transform_1, window_bounds = array<i64: 1, 32>}, {pipeline_mode = #tpu.pipeline_mode<synchronous>, transform_indices = @transform_2, window_bounds = array<i64: 1, 32>}, {pipeline_mode = #tpu.pipeline_mode<synchronous>, transform_indices = @transform_3, window_bounds = array<i64: 32, 96>}, {pipeline_mode = #tpu.pipeline_mode<synchronous>, transform_indices = @transform_4, window_bounds = array<i64: 1, 96>}, {pipeline_mode = #tpu.pipeline_mode<synchronous>, transform_indices = @transform_5, window_bounds = array<i64: 32, 32>}, {pipeline_mode = #tpu.pipeline_mode<synchronous>, transform_indices = @transform_6, window_bounds = array<i64: 1, 32>}, {pipeline_mode = #tpu.pipeline_mode<synchronous>, transform_indices = @transform_7, window_bounds = array<i64: 4, 16, 16>}, {transform_indices = @transform_8, window_bounds = array<i64: 4, 16, 32>}]} {
    %c0 = arith.constant 0 : index
    %c0_0 = arith.constant 0 : index
    %c0_1 = arith.constant 0 : index
    %0 = vector.load %arg1[%c0, %c0_0, %c0_1] : memref<4x16x32xf32, #tpu.memory_space<vmem>>, vector<4x16x32xf32>
    %1 = vector.shape_cast %0 : vector<4x16x32xf32> to vector<64x32xf32>
    %cst = arith.constant dense<0.000000e+00> : vector<64xf32>
    %2 = vector.multi_reduction <add>, %1, %cst [1] : vector<64x32xf32> to vector<64xf32>
    %3 = vector.shape_cast %2 : vector<64xf32> to vector<64x1xf32>
    %cst_2 = arith.constant 3.200000e+01 : f32
    %4 = vector.broadcast %cst_2 : f32 to vector<64x1xf32>
    %5 = arith.divf %3, %4 : vector<64x1xf32>
    %6 = vector.broadcast %5 : vector<64x1xf32> to vector<64x32xf32>
    %7 = arith.subf %1, %6 : vector<64x32xf32>
    %8 = arith.mulf %7, %7 : vector<64x32xf32>
    %cst_3 = arith.constant dense<0.000000e+00> : vector<64xf32>
    %9 = vector.multi_reduction <add>, %8, %cst_3 [1] : vector<64x32xf32> to vector<64xf32>
    %10 = vector.shape_cast %9 : vector<64xf32> to vector<64x1xf32>
    %cst_4 = arith.constant 3.200000e+01 : f32
    %11 = vector.broadcast %cst_4 : f32 to vector<64x1xf32>
    %12 = arith.divf %10, %11 : vector<64x1xf32>
    %13 = vector.broadcast %5 : vector<64x1xf32> to vector<64x32xf32>
    %14 = arith.subf %1, %13 : vector<64x32xf32>
    %cst_5 = arith.constant 9.99999974E-6 : f32
    %15 = vector.broadcast %cst_5 : f32 to vector<64x1xf32>
    %16 = arith.addf %12, %15 : vector<64x1xf32>
    %17 = math.rsqrt %16 : vector<64x1xf32>
    %18 = vector.broadcast %17 : vector<64x1xf32> to vector<64x32xf32>
    %19 = arith.mulf %14, %18 : vector<64x32xf32>
    %c0_6 = arith.constant 0 : index
    %c0_7 = arith.constant 0 : index
    %20 = vector.load %arg2[%c0_6, %c0_7] : memref<1x32xf32, #tpu.memory_space<vmem>>, vector<1x32xf32>
    %21 = vector.broadcast %20 : vector<1x32xf32> to vector<64x32xf32>
    %22 = arith.mulf %19, %21 : vector<64x32xf32>
    %c0_8 = arith.constant 0 : index
    %c0_9 = arith.constant 0 : index
    %23 = vector.load %arg3[%c0_8, %c0_9] : memref<1x32xf32, #tpu.memory_space<vmem>>, vector<1x32xf32>
    %24 = vector.broadcast %23 : vector<1x32xf32> to vector<64x32xf32>
    %25 = arith.addf %22, %24 : vector<64x32xf32>
    %c0_10 = arith.constant 0 : index
    %c0_11 = arith.constant 0 : index
    %26 = vector.load %arg4[%c0_10, %c0_11] : memref<32x96xf32, #tpu.memory_space<vmem>>, vector<32x96xf32>
    %cst_12 = arith.constant dense<0.000000e+00> : vector<64x96xf32>
    %27 = tpu.matmul %25, %26, %cst_12 {dimension_numbers = #tpu.dot_dimension_numbers<[1], [0], [0], [1], [0, 0, 1, 1], [], []>} : vector<64x32xf32>, vector<32x96xf32>, vector<64x96xf32> -> vector<64x96xf32>
    %c0_13 = arith.constant 0 : index
    %c0_14 = arith.constant 0 : index
    %28 = vector.load %arg5[%c0_13, %c0_14] : memref<1x96xf32, #tpu.memory_space<vmem>>, vector<1x96xf32>
    %29 = vector.broadcast %28 : vector<1x96xf32> to vector<64x96xf32>
    %30 = arith.addf %27, %29 : vector<64x96xf32>
    %31 = vector.extract_strided_slice %30 {offsets = [0, 0], sizes = [64, 32], strides = [1, 1]} : vector<64x96xf32> to vector<64x32xf32>
    %32 = vector.extract_strided_slice %30 {offsets = [0, 32], sizes = [64, 32], strides = [1, 1]} : vector<64x96xf32> to vector<64x32xf32>
    %33 = vector.extract_strided_slice %30 {offsets = [0, 64], sizes = [64, 32], strides = [1, 1]} : vector<64x96xf32> to vector<64x32xf32>
    %34 = vector.extract_strided_slice %31 {offsets = [0, 0], sizes = [64, 8], strides = [1, 1]} : vector<64x32xf32> to vector<64x8xf32>
    %35 = vector.extract_strided_slice %31 {offsets = [0, 8], sizes = [64, 8], strides = [1, 1]} : vector<64x32xf32> to vector<64x8xf32>
    %36 = vector.extract_strided_slice %31 {offsets = [0, 16], sizes = [64, 8], strides = [1, 1]} : vector<64x32xf32> to vector<64x8xf32>
    %37 = vector.extract_strided_slice %31 {offsets = [0, 24], sizes = [64, 8], strides = [1, 1]} : vector<64x32xf32> to vector<64x8xf32>
    %38 = vector.shape_cast %34 : vector<64x8xf32> to vector<1x64x8xf32>
    %39 = vector.shape_cast %35 : vector<64x8xf32> to vector<1x64x8xf32>
    %40 = vector.shape_cast %36 : vector<64x8xf32> to vector<1x64x8xf32>
    %41 = vector.shape_cast %37 : vector<64x8xf32> to vector<1x64x8xf32>
    %42 = tpu.concatenate %38, %39, %40, %41 in 0 : vector<1x64x8xf32>, vector<1x64x8xf32>, vector<1x64x8xf32>, vector<1x64x8xf32> -> vector<4x64x8xf32>
    %43 = vector.shape_cast %42 : vector<4x64x8xf32> to vector<16x16x8xf32>
    %cst_15 = arith.constant 0.353553385 : f32
    %44 = vector.broadcast %cst_15 : f32 to vector<16x16x8xf32>
    %45 = arith.mulf %43, %44 : vector<16x16x8xf32>
    %46 = vector.extract_strided_slice %32 {offsets = [0, 0], sizes = [64, 8], strides = [1, 1]} : vector<64x32xf32> to vector<64x8xf32>
    %47 = vector.extract_strided_slice %32 {offsets = [0, 8], sizes = [64, 8], strides = [1, 1]} : vector<64x32xf32> to vector<64x8xf32>
    %48 = vector.extract_strided_slice %32 {offsets = [0, 16], sizes = [64, 8], strides = [1, 1]} : vector<64x32xf32> to vector<64x8xf32>
    %49 = vector.extract_strided_slice %32 {offsets = [0, 24], sizes = [64, 8], strides = [1, 1]} : vector<64x32xf32> to vector<64x8xf32>
    %50 = vector.shape_cast %46 : vector<64x8xf32> to vector<1x64x8xf32>
    %51 = vector.shape_cast %47 : vector<64x8xf32> to vector<1x64x8xf32>
    %52 = vector.shape_cast %48 : vector<64x8xf32> to vector<1x64x8xf32>
    %53 = vector.shape_cast %49 : vector<64x8xf32> to vector<1x64x8xf32>
    %54 = tpu.concatenate %50, %51, %52, %53 in 0 : vector<1x64x8xf32>, vector<1x64x8xf32>, vector<1x64x8xf32>, vector<1x64x8xf32> -> vector<4x64x8xf32>
    %55 = vector.shape_cast %54 : vector<4x64x8xf32> to vector<16x16x8xf32>
    %56 = vector.extract_strided_slice %33 {offsets = [0, 0], sizes = [64, 8], strides = [1, 1]} : vector<64x32xf32> to vector<64x8xf32>
    %57 = vector.extract_strided_slice %33 {offsets = [0, 8], sizes = [64, 8], strides = [1, 1]} : vector<64x32xf32> to vector<64x8xf32>
    %58 = vector.extract_strided_slice %33 {offsets = [0, 16], sizes = [64, 8], strides = [1, 1]} : vector<64x32xf32> to vector<64x8xf32>
    %59 = vector.extract_strided_slice %33 {offsets = [0, 24], sizes = [64, 8], strides = [1, 1]} : vector<64x32xf32> to vector<64x8xf32>
    %60 = vector.shape_cast %56 : vector<64x8xf32> to vector<1x64x8xf32>
    %61 = vector.shape_cast %57 : vector<64x8xf32> to vector<1x64x8xf32>
    %62 = vector.shape_cast %58 : vector<64x8xf32> to vector<1x64x8xf32>
    %63 = vector.shape_cast %59 : vector<64x8xf32> to vector<1x64x8xf32>
    %64 = tpu.concatenate %60, %61, %62, %63 in 0 : vector<1x64x8xf32>, vector<1x64x8xf32>, vector<1x64x8xf32>, vector<1x64x8xf32> -> vector<4x64x8xf32>
    %65 = vector.shape_cast %64 : vector<4x64x8xf32> to vector<16x16x8xf32>
    "tpu.trace_start"() <{level = 10 : i32, message = "bnd,bmd->bnm"}> : () -> ()
    %cst_16 = arith.constant dense<0.000000e+00> : vector<16x16x16xf32>
    %66 = tpu.matmul %45, %55, %cst_16 {dimension_numbers = #tpu.dot_dimension_numbers<[2], [2], [1], [1], [0, 0, 0, 1, 1, 1], [0], [0]>} : vector<16x16x8xf32>, vector<16x16x8xf32>, vector<16x16x16xf32> -> vector<16x16x16xf32>
    "tpu.trace_stop"() : () -> ()
    %67 = vector.shape_cast %66 : vector<16x16x16xf32> to vector<4x4x16x16xf32>
    %c0_17 = arith.constant 0 : index
    %c0_18 = arith.constant 0 : index
    %c0_19 = arith.constant 0 : index
    %68 = vector.load %arg8[%c0_17, %c0_18, %c0_19] : memref<4x16x16xf32, #tpu.memory_space<vmem>>, vector<4x16x16xf32>
    %69 = vector.shape_cast %68 : vector<4x16x16xf32> to vector<4x1x16x16xf32>
    %70 = vector.broadcast %69 : vector<4x1x16x16xf32> to vector<4x4x16x16xf32>
    %71 = arith.addf %67, %70 : vector<4x4x16x16xf32>
    %72 = vector.shape_cast %71 : vector<4x4x16x16xf32> to vector<16x16x16xf32>
    %cst_20 = arith.constant dense<0xFF800000> : vector<16x16xf32>
    %73 = vector.multi_reduction <maximumf>, %72, %cst_20 [2] : vector<16x16x16xf32> to vector<16x16xf32>
    %74 = vector.shape_cast %73 : vector<16x16xf32> to vector<16x16x1xf32>
    %75 = vector.broadcast %74 : vector<16x16x1xf32> to vector<16x16x16xf32>
    %76 = arith.subf %72, %75 : vector<16x16x16xf32>
    %77 = math.exp %76 : vector<16x16x16xf32>
    %cst_21 = arith.constant dense<0.000000e+00> : vector<16x16xf32>
    %78 = vector.multi_reduction <add>, %77, %cst_21 [2] : vector<16x16x16xf32> to vector<16x16xf32>
    %79 = vector.shape_cast %78 : vector<16x16xf32> to vector<16x16x1xf32>
    %80 = tpu.reciprocal %79 {approx = true} : vector<16x16x1xf32> -> vector<16x16x1xf32>
    %81 = vector.broadcast %80 : vector<16x16x1xf32> to vector<16x16x16xf32>
    %82 = arith.mulf %77, %81 : vector<16x16x16xf32>
    "tpu.trace_start"() <{level = 10 : i32, message = "bnm,bmd->bnd"}> : () -> ()
    %cst_22 = arith.constant dense<0.000000e+00> : vector<16x16x8xf32>
    %83 = tpu.matmul %82, %65, %cst_22 {dimension_numbers = #tpu.dot_dimension_numbers<[2], [1], [1], [2], [0, 0, 0, 1, 1, 2], [0], [0]>} : vector<16x16x16xf32>, vector<16x16x8xf32>, vector<16x16x8xf32> -> vector<16x16x8xf32>
    "tpu.trace_stop"() : () -> ()
    %84 = vector.shape_cast %83 : vector<16x16x8xf32> to vector<4x64x8xf32>
    %85 = vector.extract_strided_slice %84 {offsets = [0, 0, 0], sizes = [1, 64, 8], strides = [1, 1, 1]} : vector<4x64x8xf32> to vector<1x64x8xf32>
    %86 = vector.shape_cast %85 : vector<1x64x8xf32> to vector<64x8xf32>
    %87 = vector.extract_strided_slice %84 {offsets = [1, 0, 0], sizes = [1, 64, 8], strides = [1, 1, 1]} : vector<4x64x8xf32> to vector<1x64x8xf32>
    %88 = vector.shape_cast %87 : vector<1x64x8xf32> to vector<64x8xf32>
    %89 = vector.extract_strided_slice %84 {offsets = [2, 0, 0], sizes = [1, 64, 8], strides = [1, 1, 1]} : vector<4x64x8xf32> to vector<1x64x8xf32>
    %90 = vector.shape_cast %89 : vector<1x64x8xf32> to vector<64x8xf32>
    %91 = vector.extract_strided_slice %84 {offsets = [3, 0, 0], sizes = [1, 64, 8], strides = [1, 1, 1]} : vector<4x64x8xf32> to vector<1x64x8xf32>
    %92 = vector.shape_cast %91 : vector<1x64x8xf32> to vector<64x8xf32>
    %93 = tpu.concatenate %86, %88, %90, %92 in 1 : vector<64x8xf32>, vector<64x8xf32>, vector<64x8xf32>, vector<64x8xf32> -> vector<64x32xf32>
    %c0_23 = arith.constant 0 : index
    %c0_24 = arith.constant 0 : index
    %94 = vector.load %arg6[%c0_23, %c0_24] : memref<32x32xf32, #tpu.memory_space<vmem>>, vector<32x32xf32>
    %cst_25 = arith.constant dense<0.000000e+00> : vector<64x32xf32>
    %95 = tpu.matmul %93, %94, %cst_25 {dimension_numbers = #tpu.dot_dimension_numbers<[1], [0], [0], [1], [0, 0, 1, 1], [], []>} : vector<64x32xf32>, vector<32x32xf32>, vector<64x32xf32> -> vector<64x32xf32>
    %c0_26 = arith.constant 0 : index
    %c0_27 = arith.constant 0 : index
    %96 = vector.load %arg7[%c0_26, %c0_27] : memref<1x32xf32, #tpu.memory_space<vmem>>, vector<1x32xf32>
    %97 = vector.broadcast %96 : vector<1x32xf32> to vector<64x32xf32>
    %98 = arith.addf %95, %97 : vector<64x32xf32>
    %99 = vector.shape_cast %98 : vector<64x32xf32> to vector<4x16x32xf32>
    %c0_28 = arith.constant 0 : index
    %c0_29 = arith.constant 0 : index
    %c0_30 = arith.constant 0 : index
    %100 = vector.load %arg9[%c0_28, %c0_29, %c0_30] : memref<4x16x32xf32, #tpu.memory_space<vmem>>, vector<4x16x32xf32>
    tpu.vector_store %arg9[%c0_28, %c0_29, %c0_30], %99 {strides = array<i32>} : memref<4x16x32xf32, #tpu.memory_space<vmem>>, vector<4x16x32xf32>,
    return
  }
  func.func @transform_0(%arg0: i32) -> (i32, i32, i32) {
    %c0_i32 = arith.constant 0 : i32
    %c0_i32_0 = arith.constant 0 : i32
    %c0_i32_1 = arith.constant 0 : i32
    return %arg0, %c0_i32, %c0_i32_0 : i32, i32, i32
  }
  func.func @transform_1(%arg0: i32) -> (i32, i32) {
    %c0_i32 = arith.constant 0 : i32
    %c0_i32_0 = arith.constant 0 : i32
    %c0_i32_1 = arith.constant 0 : i32
    return %c0_i32, %c0_i32_0 : i32, i32
  }
  func.func @transform_2(%arg0: i32) -> (i32, i32) {
    %c0_i32 = arith.constant 0 : i32
    %c0_i32_0 = arith.constant 0 : i32
    %c0_i32_1 = arith.constant 0 : i32
    return %c0_i32, %c0_i32_0 : i32, i32
  }
  func.func @transform_3(%arg0: i32) -> (i32, i32) {
    %c0_i32 = arith.constant 0 : i32
    %c0_i32_0 = arith.constant 0 : i32
    %c0_i32_1 = arith.constant 0 : i32
    return %c0_i32, %c0_i32_0 : i32, i32
  }
  func.func @transform_4(%arg0: i32) -> (i32, i32) {
    %c0_i32 = arith.constant 0 : i32
    %c0_i32_0 = arith.constant 0 : i32
    %c0_i32_1 = arith.constant 0 : i32
    return %c0_i32, %c0_i32_0 : i32, i32
  }
  func.func @transform_5(%arg0: i32) -> (i32, i32) {
    %c0_i32 = arith.constant 0 : i32
    %c0_i32_0 = arith.constant 0 : i32
    %c0_i32_1 = arith.constant 0 : i32
    return %c0_i32, %c0_i32_0 : i32, i32
  }
  func.func @transform_6(%arg0: i32) -> (i32, i32) {
    %c0_i32 = arith.constant 0 : i32
    %c0_i32_0 = arith.constant 0 : i32
    %c0_i32_1 = arith.constant 0 : i32
    return %c0_i32, %c0_i32_0 : i32, i32
  }
  func.func @transform_7(%arg0: i32) -> (i32, i32, i32) {
    %c0_i32 = arith.constant 0 : i32
    %c0_i32_0 = arith.constant 0 : i32
    %c0_i32_1 = arith.constant 0 : i32
    %c0_i32_2 = arith.constant 0 : i32
    return %c0_i32, %c0_i32_0, %c0_i32_1 : i32, i32, i32
  }
  func.func @transform_8(%arg0: i32) -> (i32, i32, i32) {
    %c0_i32 = arith.constant 0 : i32
    %c0_i32_0 = arith.constant 0 : i32
    %c0_i32_1 = arith.constant 0 : i32
    return %arg0, %c0_i32, %c0_i32_0 : i32, i32, i32
  }
}

</mosaic_0001>

<bundles_post_ra>
// kernel: tpu_custom_call.1
= control target key start
LH: loop header
LB: loop body
LE: loop exit
PB: predicated region body
PF: predicated region fallthrough
CT: control target
= control target key end

     0   :  { %s6581_s0 = inlined_call_operand.hbm [shape: f32[8,16,32], index: 0, kind: input, shape index: {}]   ;;  %s6582_s1 = inlined_call_operand.vmem [shape: f32[1,32], index: 1, kind: input, shape index: {}]   ;;  %s6583_s2 = inlined_call_operand.vmem [shape: f32[1,32], index: 2, kind: input, shape index: {}]   ;;  %s6584_s3 = inlined_call_operand.hbm [shape: f32[32,96], index: 3, kind: input, shape index: {}]   ;;  %s6585_s4 = inlined_call_operand.vmem [shape: f32[1,96], index: 4, kind: input, shape index: {}]   ;;  %s6586_s5 = inlined_call_operand.hbm [shape: f32[32,32], index: 5, kind: input, shape index: {}]   ;;  %s6587_s6 = inlined_call_operand.vmem [shape: f32[1,32], index: 6, kind: input, shape index: {}]   ;;  %s6588_s7 = inlined_call_operand.hbm [shape: f32[4,16,16], index: 7, kind: input, shape index: {}]   ;;  %s6589_s8 = inlined_call_operand.hbm [shape: f32[8,16,32], index: 8, kind: output, shape index: {}]  }
   0x1   :  { %6606 = sst [smem:[#allocation25_spill]] %s6584_s3 }
   0x2   :  { %6607 = sst [smem:[#allocation26_spill]] %s6586_s5 }
   0x3   :  { %13 = vsyncpa [#allocation3], 0 }
   0x4   :  { %15 = vsyncpa [#allocation3 + $0x1], 0 }
   0x5   :  { %16 = vsyncpa [#allocation6], 0 }
   0x6   :  { %17 = vsyncpa [#allocation9], 0 }
   0x7   :  { %18 = vsyncpa [#allocation4], 0 }
   0x8   :  { %20 = vsyncpa [#allocation4 + $0x1], 0  ;;  %s5402_s27 = smov 0   ;;  %s5404_s28 = smov 0  }
   0x9   :  { %s5406_s29 = smov 0   ;;  %s5408_s30 = smov 0  }
   0xa LB: > { %s5423_s9 = sadd.s32 4294967295, %s5339_s30   ;;  %s4363_s10 = sadd.s32 4294967294, %s5339_s30   ;;  %s5339_s30 = sphi %s5408_s30, %s6650_s30   ;;  %s5335_s29 = sphi %s5406_s29, %s6649_s29   ;;  %s5331_s28 = sphi %s5404_s28, %s6648_s28   ;;  %s5327_s27 = sphi %s5402_s27, %s6647_s27  }
   0xb   : > { %p46_p0 = scmp.ne.s32.totalorder %s5331_s28, %s5327_s27  ;;  %p6590_p1 = scmp.eq.s32.totalorder %s5423_s9, 0 }
   0xc   : > { %p217_p2 = scmp.eq.s32.totalorder %s5423_s9, 1  ;;  %p223_p3 = scmp.eq.s32.totalorder %s4363_s10, 1 }
   0xd   : > { %p5432_p4 = por %p6590_p1, %p46_p0  ;;  %p4364_p5 = scmp.ge.s32.totalorder %s5339_s30, 1 }
   0xe   : > { %p5437_p6 = por %p223_p3, %p46_p0  ;;  %p230_p7 = scmp.lt.s32.totalorder %s5339_s30, 3 }
   0xf   : > { %s6608_s11 = scalar_select %p5432_p4, 1, 0 }
  0x10   : > { %s6609_s12 = scalar_select %p5437_p6, 1, 0 }
  0x11   : > { %p5442_p8 = pnand %p4364_p5, %p230_p7  ;;  %s5341_s14 = smov [#allocation5]  }
  0x12   : > { %s248_s15 = sshll.u32 %s5341_s14, 4  ;;  %s5342_s17 = smov [#allocation7]   ;;  %s249_s15 = int_to_ptr.vmem [resolvable:$true] %s248_s15 }
  0x13   : > { %s6610_s13 = scalar_select %p5442_p8, 1, 0 }
  0x14   : > { %p4945_p9 = pneg %p5442_p8  ;;  %s264_s18 = sshll.u32 %s5342_s17, 4  ;;  %s265_s18 = int_to_ptr.vmem [resolvable:$true] %s264_s18 }
  0x15   : > { %s5343_s19 = smov [#allocation8]   ;;  %s5172_s21 = scalar_lea.vmem %s249_s15, 512 }
  0x16   : > { %p5451_p11 = pnand %p4945_p9, %p6590_p1  ;;  %s280_s20 = sshll.u32 %s5343_s19, 4  ;;  %s281_s20 = int_to_ptr.vmem [resolvable:$true] %s280_s20 }
  0x17   : > { %p5173_p13 = scmp.ne.s32.totalorder %s249_s15, %s5172_s21  ;;  %p5180_p5 = scmp.lt.s32.totalorder %s249_s15, %s249_s15 }
  0x18   : > { %p5163_p12 = pneg %p5451_p11  ;;  %p5181_p7 = scmp.lt.s32.totalorder %s5172_s21, %s5172_s21 }
  0x1a   : > { %p5175_p0 = pnand %p5173_p13, %p5163_p12  ;;  %p5182_p9 = por %p5181_p7, %p5180_p5 }
  0x1c   : > { %p5176_p3 = pneg %p5175_p0 }
  0x1e   : > { %p5183_p10 = pnand %p5182_p9, %p5176_p3 }
  0x20   : > { %5186 = shalt.err (!%p5183_p10)
}
  0x21   : > { %s6591_s22 = smov 128   ;;  %s6592_s23 = smov 8  }
  0x22   : > { %s6612_s3 = sld [smem:[#allocation25_spill]]  ;;  %s5198_s26 = scalar_lea.vmem %s265_s18, 512 }
  0x23   : > { %p5199_p13 = scmp.ne.s32.totalorder %s265_s18, %s5198_s26  ;;  %p5206_p3 = scmp.lt.s32.totalorder %s265_s18, %s265_s18 }
  0x24   : > { %p5207_p10 = scmp.lt.s32.totalorder %s5198_s26, %s5198_s26 }
  0x25   : > { %p5201_p0 = pnand %p5199_p13, %p5163_p12 }
  0x26   : > { %p5208_p7 = por %p5207_p10, %p5206_p3 }
  0x27   : > { %p5202_p5 = pneg %p5201_p0 }
  0x28   : > { %4948 = dma.hbm_to_vmem [thread:$0]  (!%p5451_p11), %s6612_s3, 512, %s249_s15, [#allocation6], %s6591_s22, %s6591_s22, %s6592_s23  }
  0x29   : > { %p5209_p9 = pnand %p5208_p7, %p5202_p5 }
  0x2b   : > { %5212 = shalt.err (!%p5209_p9)
}
  0x2c   : > { %s6613_s5 = sld [smem:[#allocation26_spill]]  ;;  %s5224_s15 = scalar_lea.vmem %s281_s20, 1024 }
  0x2d   : > { %p5225_p1 = scmp.ne.s32.totalorder %s281_s20, %s5224_s15  ;;  %p5232_p3 = scmp.lt.s32.totalorder %s281_s20, %s281_s20 }
  0x2e   : > { %p5233_p5 = scmp.lt.s32.totalorder %s5224_s15, %s5224_s15 }
  0x2f   : > { %p5227_p13 = pnand %p5225_p1, %p5163_p12 }
  0x30   : > { %p5234_p10 = por %p5233_p5, %p5232_p3 }
  0x31   : > { %p5228_p0 = pneg %p5227_p13 }
  0x32   : > { %4951 = dma.hbm_to_vmem [thread:$0]  (!%p5451_p11), %s6613_s5, 512, %s265_s18, [#allocation6], %s6591_s22, %s6591_s22, %s6592_s23  }
  0x33   : > { %p5235_p7 = pnand %p5234_p10, %p5228_p0 }
  0x35   : > { %5238 = shalt.err (!%p5235_p7)
}
  0x36   : > { %4954 = dma.hbm_to_vmem [thread:$0]  (!%p5451_p11), %s6588_s7, 1024, %s281_s20, [#allocation9], %s6591_s22, %s6591_s22, %s6592_s23  }
  0x37   : > { %s5491_s18 = sadd.s32 1, %s5339_s30   ;;  %s33_s21 = sadd.s32 1, %s5335_s29 }
  0x38   : > { %s30_s16 = ssub.s32 %s5339_s30, %s5491_s18  ;;  %p40_p12 = scmp.ne.s32.totalorder %s5335_s29, %s5331_s28 }
  0x39   : > { %p31_p1 = scmp.eq.s32.totalorder %s30_s16, 0  ;;  %p41_p9 = scmp.eq.s32.totalorder %s5339_s30, 0 }
  0x3a   : > { %p4966_p13 = scmp.lt.s32.totalorder %s5339_s30, 2  ;;  %p5505_p3 = por %p217_p2, %p40_p12 }
  0x3b   : > { %s5501_s24 = scalar_select %p31_p1, %s5335_s29, %s33_s21  }
  0x3c   : > { %p42_p0 = por %p41_p9, %p40_p12  ;;  %s294_s26 = sand.u32 1, %s5335_s29  }
  0x3d   : > { %s6614_s25 = scalar_select %p5505_p3, 1, 0 }
  0x3e   : > { %s4502_s10 = sshll.u32 %s5339_s30, 10  ;;  %s4369_s20 = sshll.u32 %s294_s26, 6 }
  0x3f   : > { %s5514_s17 = scalar_lea.hbm %s6581_s0, %s4502_s10  ;;  %s298_s19 = scalar_lea.vmem [#allocation2], %s4369_s20 }
  0x40   : > { %s306_s16 = sshll.u32 %s298_s19, 4  ;;  %p5516_p11 = pnand %p4966_p13, %p42_p0  ;;  %s5520_s16 = int_to_ptr.vmem [resolvable:$true] %s306_s16 }
  0x41   : > { %s5522_s22 = scalar_lea.sflag [#allocation3], %s294_s26  ;;  %s5239_s23 = scalar_lea.hbm %s5514_s17, 1024 }
  0x42   : > { %p5240_p2 = scmp.ne.s32.totalorder %s5514_s17, %s5239_s23  ;;  %p5241_p5 = pneg %p5516_p11 }
  0x43   : > { %s5244_s20 = scalar_lea.hbm %s6581_s0, 2048  ;;  %p5245_p1 = scmp.lt.s32.totalorder %s5514_s17, %s6581_s0 }
  0x44   : > { %p5242_p10 = pnand %p5241_p5, %p5240_p2  ;;  %p5246_p12 = scmp.lt.s32.totalorder %s5244_s20, %s5239_s23 }
  0x46   : > { %p5243_p7 = pneg %p5242_p10  ;;  %p5247_p9 = por %p5246_p12, %p5245_p1 }
  0x48   : > { %p5248_p13 = pnand %p5247_p9, %p5243_p7 }
  0x4a   : > { %5251 = shalt.err (!%p5248_p13)
}
  0x4b   : > { %s5252_s26 = scalar_lea.vmem %s5520_s16, 1024  ;;  %s5346_s3 = smov [#allocation2]  }
  0x4c   : > { %p5253_p0 = scmp.ne.s32.totalorder %s5520_s16, %s5252_s26  ;;  %s5257_s5 = sshll.u32 %s5346_s3, 4  ;;  %s5258_s5 = int_to_ptr.vmem [resolvable:$false] %s5257_s5 }
  0x4d   : > { %s5259_s10 = scalar_lea.vmem %s5258_s5, 2048  ;;  %p5260_p10 = scmp.lt.s32.totalorder %s5520_s16, %s5258_s5 }
  0x4e   : > { %p5255_p6 = pnand %p5253_p0, %p5241_p5  ;;  %p5261_p3 = scmp.lt.s32.totalorder %s5259_s10, %s5252_s26 }
  0x50   : > { %p5256_p2 = pneg %p5255_p6  ;;  %p5262_p4 = por %p5261_p3, %p5260_p10 }
  0x52   : > { %p5263_p8 = pnand %p5262_p4, %p5256_p2 }
  0x54   : > { %5266 = shalt.err (!%p5263_p8)
}
  0x55   : > { %s6616_s23 = smov 8   ;;  %s6617_s14 = smov 128  }
  0x56   : > { %4958 = dma.hbm_to_vmem [thread:$0]  (!%p5516_p11), %s5514_s17, 1024, %s5520_s16, %s5522_s22, %s6617_s14, %s6617_s14, %s6616_s23  }
  0x57   : > { %p6618_p6 = scmp.ne.s32.totalorder %s6610_s13, 0 }
  0x59   : > { %318 = sbr.rel (%p6618_p6) target bundleno = 1990 (0x7c6), region = 52 }
  0x5e   : > { %s5549_s3 = sand.u32 1, %s5331_s28   ;;  %p6619_p4 = scmp.ne.s32.totalorder %s6608_s11, 0 }
  0x5f   : > { %s4374_s5 = sshll.u32 %s5549_s3, 6  ;;  %s321_s20 = scalar_lea.sflag [#allocation3], %s5549_s3 }
  0x60   : > { %s324_s21 = scalar_lea.vmem [#allocation2], %s4374_s5 }
  0x61   : > { %5310 = dma.done.wait (%p6619_p4), %s321_s20, 1024  }
  0x62   : > { %5312 = vsyncadd (%p6619_p4), %s321_s20, 4294966272  ;;  %p6620_p8 = scmp.eq.s32.totalorder %s5423_s9, 0 }
  0x64   : > { %5314 = dma.done.wait (%p6620_p8), [#allocation6], 1024   ;;  %p6621_p3 = pmov %p6620_p8 }
  0x66   : > { %5316 = vsyncadd (%p6621_p3), [#allocation6], 4294966272  ;;  %p6622_p11 = pmov %p6621_p3 }
  0x67   : > { %p6623_p5 = pmov %p6621_p3 }
  0x68   : > { %5318 = dma.done.wait (%p6622_p11), [#allocation9], 1024  }
  0x69   : > { %5320 = vsyncadd (%p6623_p5), [#allocation9], 4294966272  ;;  %vm379_vm0 = vcmask 261120   ;;  %v371_v0 = vld [vmem:[%s324_s21] sm:$0xff]  ;;  %v373_v1 = vld [vmem:[%s324_s21 + $0x10] sm:$0xff]  ;;  %s5347_s19 = smov 120  }
  0x6a   : > { %v372_v2 = vld [vmem:[%s324_s21 + $0x8] sm:$0xff]  ;;  %v380_v3 = vsel %vm379_vm0, %v371_v0, 0.0  ;;  %v386_v4 = vsel %vm379_vm0, %v373_v1, 0.0  ;;  %v374_v5 = vld [vmem:[%s324_s21 + $0x18] sm:$0xff]  ;;  %v375_v8 = vld [vmem:[%s324_s21 + $0x20] sm:$0xff]  ;;  %vm771_vm1 = vcmask 64512  }
  0x6b   : > { %381 = vadd.xlane.f32.xlu0 %v380_v3  ;;  %387 = vadd.xlane.f32.xlu1 %v386_v4  ;;  %v383_v6 = vsel %vm379_vm0, %v372_v2, 0.0  ;;  %v389_v7 = vsel %vm379_vm0, %v374_v5, 0.0  ;;  %v376_v9 = vld [vmem:[%s324_s21 + $0x28] sm:$0xff]  ;;  %v392_v10 = vsel %vm379_vm0, %v375_v8, 0.0  ;;  %v377_v12 = vld [vmem:[%s324_s21 + $0x30] sm:$0xff]  ;;  %v378_v13 = vld [vmem:[%s324_s21 + $0x38] sm:$0xff] }
  0x6c   : > { %v395_v11 = vsel %vm379_vm0, %v376_v9, 0.0  ;;  %v398_v14 = vsel %vm379_vm0, %v377_v12, 0.0  ;;  %v401_v15 = vsel %vm379_vm0, %v378_v13, 0.0  ;;  %v518_v56 = vld [vmem:[#allocation5 + $0x18] sm:$0xff]  ;;  %v517_v57 = vld [vmem:[#allocation5 + $0x10] sm:$0xff]  ;;  %v516_v58 = vld [vmem:[#allocation5 + $0x8] sm:$0xff] }
  0x6d   : > { %4657 = vmatprep.subr.mxu0 %v518_v56  ;;  %4921 = vmatprep.subr.mxu1 %v518_v56  ;;  %v515_v59 = vld [vmem:[#allocation5] sm:$0xff]  ;;  %s5348_s26 = smov 112   ;;  %s5349_s10 = smov 104   ;;  %vm2232_vm2 = vcmask 130048   ;;  %vm4089_vm3 = vcmask 195584  }
  0x6e   : > { %4658 = vmatpush3.msra.mxu0 %v518_v56  ;;  %4925 = vmatpush3.msra.mxu1 %v518_v56  ;;  %s5350_s23 = smov 96   ;;  %s5351_s14 = smov 64  }
  0x6f   : > { %384 = vadd.xlane.f32.xlu0 %v383_v6  ;;  %390 = vadd.xlane.f32.xlu1 %v389_v7  ;;  %s5352_s20 = smov 8   ;;  %s5353_s21 = smov 16  }
  0x70   : > { %4659 = vmatprep.subr.mxu0 %v517_v57  ;;  %4922 = vmatprep.subr.mxu1 %v517_v57  ;;  %s5354_s11 = smov 24   ;;  %s368_s17 = scalar_lea.vmem [#allocation10], %s4374_s5 }
  0x71   : > { %4660 = vmatpush3.msra.mxu0 %v517_v57  ;;  %4926 = vmatpush3.msra.mxu1 %v517_v57  ;;  %s4504_s5 = sshll.u32 %s5423_s9, 10  ;;  %s4261_s16 = sshll.u32 %s368_s17, 4  ;;  %s6536_s16 = int_to_ptr.vmem [resolvable:$true] %s4261_s16 }
  0x72   : > { %4661 = vmatprep.subr.mxu0 %v516_v58  ;;  %4923 = vmatprep.subr.mxu1 %v516_v58  ;;  %s4247_s9 = scalar_lea.sflag [#allocation4], %s5549_s3  ;;  %p6644_p1 = scmp.ne.s32.totalorder %s6614_s25, 0 }
  0x73   : > { %393 = vadd.xlane.f32.xlu0 %v392_v10  ;;  %396 = vadd.xlane.f32.xlu1 %v395_v11 }
  0x74   : > { %4662 = vmatpush3.msra.mxu0 %v516_v58  ;;  %4927 = vmatpush3.msra.mxu1 %v516_v58 }
  0x75   : > { %4663 = vmatprep.subr.mxu0 %v515_v59  ;;  %4924 = vmatprep.subr.mxu1 %v515_v59 }
  0x76   : > { %4664 = vmatpush3.msra.mxu0 %v515_v59  ;;  %4928 = vmatpush3.msra.mxu1 %v515_v59 }
  0x77   : > { %399 = vadd.xlane.f32.xlu0 %v398_v14  ;;  %402 = vadd.xlane.f32.xlu1 %v401_v15 }
  0xf4   : > { %v382_v16 = vpop.xlane.xlu0 %381  ;;  %v388_v17 = vpop.xlane.xlu1 %387 }
  0xf5   : > { %v405_v18 = vmul.f32 0.03125, %v382_v16  ;;  %v407_v19 = vmul.f32 0.03125, %v388_v17 }
  0xf7   : > { %v5575_v20 = vsub.f32 %v371_v0, %v405_v18  ;;  %v5577_v21 = vsub.f32 %v373_v1, %v407_v19 }
  0xf8   : > { %v385_v22 = vpop.xlane.xlu0 %384  ;;  %v391_v23 = vpop.xlane.xlu1 %390 }
  0xf9   : > { %v406_v24 = vmul.f32 0.03125, %v385_v22  ;;  %v408_v25 = vmul.f32 0.03125, %v391_v23  ;;  %v421_v26 = vmul.f32 %v5575_v20, %v5575_v20  ;;  %v423_v27 = vmul.f32 %v5577_v21, %v5577_v21  ;;  %v4379_v22 = vld [vmem:[%s6582_s1] ss:$0 sm:$0xff] }
  0xfb   : > { %v5583_v28 = vsub.f32 %v372_v2, %v406_v24  ;;  %v5585_v29 = vsub.f32 %v374_v5, %v408_v25  ;;  %v429_v30 = vsel %vm379_vm0, %v421_v26, 0.0  ;;  %v435_v33 = vsel %vm379_vm0, %v423_v27, 0.0  ;;  %v4380_v25 = vld [vmem:[%s6583_s2] ss:$0 sm:$0xff] }
  0xfc   : > { %430 = vadd.xlane.f32.xlu0 %v429_v30  ;;  %v394_v31 = vpop.xlane.xlu0 %393  ;;  %v397_v32 = vpop.xlane.xlu1 %396 }
  0xfd   : > { %v409_v34 = vmul.f32 0.03125, %v394_v31  ;;  %v410_v35 = vmul.f32 0.03125, %v397_v32  ;;  %v422_v36 = vmul.f32 %v5583_v28, %v5583_v28  ;;  %v424_v37 = vmul.f32 %v5585_v29, %v5585_v29 }
  0xff   : > { %v5593_v38 = vsub.f32 %v375_v8, %v409_v34  ;;  %v5595_v39 = vsub.f32 %v376_v9, %v410_v35  ;;  %v432_v40 = vsel %vm379_vm0, %v422_v36, 0.0  ;;  %v438_v43 = vsel %vm379_vm0, %v424_v37, 0.0 }
 0x100   : > { %436 = vadd.xlane.f32.xlu0 %v435_v33  ;;  %433 = vadd.xlane.f32.xlu1 %v432_v40  ;;  %v400_v41 = vpop.xlane.xlu0 %399  ;;  %v403_v42 = vpop.xlane.xlu1 %402 }
 0x101   : > { %v411_v44 = vmul.f32 0.03125, %v400_v41  ;;  %v412_v45 = vmul.f32 0.03125, %v403_v42  ;;  %v425_v46 = vmul.f32 %v5593_v38, %v5593_v38  ;;  %v426_v47 = vmul.f32 %v5595_v39, %v5595_v39 }
 0x103   : > { %v5603_v48 = vsub.f32 %v377_v12, %v411_v44  ;;  %v5605_v49 = vsub.f32 %v378_v13, %v412_v45  ;;  %v441_v50 = vsel %vm379_vm0, %v425_v46, 0.0  ;;  %v444_v51 = vsel %vm379_vm0, %v426_v47, 0.0 }
 0x104   : > { %439 = vadd.xlane.f32.xlu1 %v438_v43  ;;  %442 = vadd.xlane.f32.xlu0 %v441_v50 }
 0x105   : > { %v427_v52 = vmul.f32 %v5603_v48, %v5603_v48  ;;  %v428_v53 = vmul.f32 %v5605_v49, %v5605_v49 }
 0x107   : > { %v447_v54 = vsel %vm379_vm0, %v427_v52, 0.0  ;;  %v450_v55 = vsel %vm379_vm0, %v428_v53, 0.0 }
 0x108   : > { %445 = vadd.xlane.f32.xlu1 %v444_v51  ;;  %448 = vadd.xlane.f32.xlu0 %v447_v54 }
 0x10c   : > { %451 = vadd.xlane.f32.xlu1 %v450_v55 }
 0x185   : > { %v431_v60 = vpop.xlane.xlu0 %430 }
 0x186   : > { %v453_v61 = vmul.f32 0.03125, %v431_v60 }
 0x188   : > { %v461_v62 = vadd.f32 1e-05, %v453_v61 }
 0x189   : > { %v434_v63 = vpop.xlane.xlu1 %433  ;;  %v437_v0 = vpop.xlane.xlu0 %436 }
 0x18a   : > { %5017 = vrsqrt.f32 %v461_v62  ;;  %v454_v1 = vmul.f32 0.03125, %v434_v63  ;;  %v455_v2 = vmul.f32 0.03125, %v437_v0 }
 0x18c   : > { %v462_v3 = vadd.f32 1e-05, %v454_v1  ;;  %v463_v4 = vadd.f32 1e-05, %v455_v2 }
 0x18d   : > { %v440_v5 = vpop.xlane.xlu1 %439  ;;  %v443_v6 = vpop.xlane.xlu0 %442 }
 0x18e   : > { %5019 = vrsqrt.f32 %v462_v3  ;;  %v456_v7 = vmul.f32 0.03125, %v440_v5  ;;  %v457_v8 = vmul.f32 0.03125, %v443_v6 }
 0x18f   : > { %5021 = vrsqrt.f32 %v463_v4 }
 0x190   : > { %v464_v9 = vadd.f32 1e-05, %v456_v7  ;;  %v465_v10 = vadd.f32 1e-05, %v457_v8 }
 0x191   : > { %v446_v11 = vpop.xlane.xlu1 %445  ;;  %v449_v12 = vpop.xlane.xlu0 %448 }
 0x192   : > { %5023 = vrsqrt.f32 %v464_v9  ;;  %v458_v13 = vmul.f32 0.03125, %v446_v11  ;;  %v459_v14 = vmul.f32 0.03125, %v449_v12 }
 0x193   : > { %5025 = vrsqrt.f32 %v465_v10 }
 0x194   : > { %v466_v15 = vadd.f32 1e-05, %v458_v13  ;;  %v467_v16 = vadd.f32 1e-05, %v459_v14 }
 0x195   : > { %v452_v17 = vpop.xlane.xlu1 %451 }
 0x196   : > { %5027 = vrsqrt.f32 %v466_v15  ;;  %v460_v18 = vmul.f32 0.03125, %v452_v17 }
 0x197   : > { %v5018_v19 = vpop.eup %5017  ;;  %5029 = vrsqrt.f32 %v467_v16 }
 0x198   : > { %v468_v23 = vadd.f32 1e-05, %v460_v18  ;;  %v477_v24 = vmul.f32 %v5018_v19, %v5575_v20 }
 0x19a   : > { %5031 = vrsqrt.f32 %v468_v23  ;;  %v492_v26 = vmul.f32 %v4379_v22, %v477_v24 }
 0x19b   : > { %v5020_v27 = vpop.eup %5019 }
 0x19c   : > { %v5022_v30 = vpop.eup %5021  ;;  %v507_v31 = vadd.f32 %v4380_v25, %v492_v26  ;;  %v478_v32 = vmul.f32 %v5020_v27, %v5583_v28 }
 0x19d   : > { %v479_v33 = vmul.f32 %v5022_v30, %v5577_v21 }
 0x19e   : > { %4665 = vmatprep.mubr.msk.f32.mxu0 %vm379_vm0, %v507_v31  ;;  %v493_v34 = vmul.f32 %v4379_v22, %v478_v32 }
 0x19f   : > { %v5024_v35 = vpop.eup %5023  ;;  %v494_v36 = vmul.f32 %v4379_v22, %v479_v33 }
 0x1a0   : > { %v5026_v37 = vpop.eup %5025  ;;  %v508_v20 = vadd.f32 %v4380_v25, %v493_v34  ;;  %v480_v40 = vmul.f32 %v5024_v35, %v5585_v29 }
 0x1a1   : > { %v509_v41 = vadd.f32 %v4380_v25, %v494_v36  ;;  %v481_v42 = vmul.f32 %v5026_v37, %v5593_v38 }
 0x1a2   : > { %4666 = vmatmul.mubr.msk.f32.vlgmr.msra.gmra.mxu0 %vm379_vm0, %v508_v20  ;;  %v495_v43 = vmul.f32 %v4379_v22, %v480_v40 }
 0x1a3   : > { %v5028_v44 = vpop.eup %5027  ;;  %4668 = vmatprep.mubr.msk.f32.mxu0 %vm379_vm0, %v509_v41  ;;  %v496_v28 = vmul.f32 %v4379_v22, %v481_v42 }
 0x1a4   : > { %v5030_v21 = vpop.eup %5029  ;;  %v510_v45 = vadd.f32 %v4380_v25, %v495_v43  ;;  %v482_v46 = vmul.f32 %v5028_v44, %v5595_v39 }
 0x1a5   : > { %v511_v47 = vadd.f32 %v4380_v25, %v496_v28  ;;  %v483_v50 = vmul.f32 %v5030_v21, %v5603_v48  ;;  %v4381_v48 = vld [vmem:[%s6585_s4] ss:$0 sm:$0xff] }
 0x1a6   : > { %4669 = vmatmul.mubr.msk.f32.gmra.mxu0 %vm379_vm0, %v510_v45  ;;  %v497_v29 = vmul.f32 %v4379_v22, %v482_v46 }
 0x1a7   : > { %v5032_v51 = vpop.eup %5031  ;;  %4671 = vmatprep.mubr.msk.f32.mxu1 %vm379_vm0, %v511_v47  ;;  %v498_v38 = vmul.f32 %v4379_v22, %v483_v50 }
 0x1a8   : > { %v512_v52 = vadd.f32 %v4380_v25, %v497_v29  ;;  %v484_v53 = vmul.f32 %v5032_v51, %v5605_v49 }
 0x1a9   : > { %v513_v54 = vadd.f32 %v4380_v25, %v498_v38 }
 0x1aa   : > { %4672 = vmatmul.mubr.msk.f32.vlgmr.msra.gmra.mxu1 %vm379_vm0, %v512_v52  ;;  %v499_v55 = vmul.f32 %v4379_v22, %v484_v53 }
 0x1ab   : > { %4674 = vmatprep.mubr.msk.f32.mxu1 %vm379_vm0, %v513_v54 }
 0x1ac   : > { %v514_v39 = vadd.f32 %v4380_v25, %v499_v55 }
 0x1ae   : > { %4675 = vmatmul.mubr.msk.f32.gmra.mxu1 %vm379_vm0, %v514_v39 }
 0x262   : > { %v4667_v56 = vpop.f32.mrf.mxu0 }
 0x263   : > { %v5640_v57 = vadd.f32 %v4667_v56, %v4381_v48 }
 0x264   : > { %v616_v58 = vpop.f32.mrf.mxu0 }
 0x265   : > { %v5642_v59 = vadd.f32 %v4381_v48, %v616_v58  ;;  %665 = vrot.lane.b32.xlu0 %v5640_v57, %s5347_s19  ;;  %v736_v20 = vmul.f32 0.35355338, %v5640_v57 }
 0x266   : > { %v4670_v0 = vpop.f32.mrf.mxu0 }
 0x267   : > { %663 = vrot.lane.b32.xlu1 %v5642_v59, %s5347_s19  ;;  %v735_v49 = vmul.f32 0.35355338, %v5642_v59  ;;  %v5659_v3 = vadd.f32 %v4670_v0, %v4381_v48 }
 0x268   : > { %v626_v4 = vpop.f32.mrf.mxu0 }
 0x269   : > { %4681 = vmatprep.mubr.msk.f32.mxu1 %vm771_vm1, %v735_v49  ;;  %v5667_v6 = vadd.f32 %v4381_v48, %v626_v4  ;;  %v738_v21 = vmul.f32 0.35355338, %v5659_v3 }
 0x26a   : > { %v4673_v60 = vpop.f32.mrf.mxu1 }
 0x26b   : > { %v5650_v61 = vadd.f32 %v4673_v60, %v4381_v48  ;;  %v737_v41 = vmul.f32 0.35355338, %v5667_v6 }
 0x26c   : > { %v636_v62 = vpop.f32.mrf.mxu1 }
 0x26d   : > { %v5652_v63 = vadd.f32 %v4381_v48, %v636_v62  ;;  %673 = vrot.lane.b32.xlu0 %v5650_v61, %s5347_s19  ;;  %v740_v50 = vmul.f32 0.35355338, %v5650_v61 }
 0x26e   : > { %v4676_v2 = vpop.f32.mrf.mxu1 }
 0x26f   : > { %671 = vrot.lane.b32.xlu1 %v5652_v63, %s5347_s19  ;;  %v739_v1 = vmul.f32 0.35355338, %v5652_v63  ;;  %v5663_v5 = vadd.f32 %v4676_v2, %v4381_v48 }
 0x270   : > { %v646_v7 = vpop.f32.mrf.mxu1 }
 0x271   : > { %689 = vrot.lane.b32.xlu0 %v5640_v57, %s5348_s26  ;;  %4695 = vmatprep.mubr.msk.f32.mxu0 %vm771_vm1, %v739_v1  ;;  %v5675_v8 = vadd.f32 %v4381_v48, %v646_v7  ;;  %v742_v51 = vmul.f32 0.35355338, %v5663_v5 }
 0x273   : > { %669 = vrot.lane.b32.xlu1 %v5659_v3, %s5347_s19  ;;  %v741_v46 = vmul.f32 0.35355338, %v5675_v8 }
 0x275   : > { %677 = vrot.lane.b32.xlu0 %v5663_v5, %s5347_s19 }
 0x277   : > { %667 = vrot.lane.b32.xlu1 %v5667_v6, %s5347_s19 }
 0x279   : > { %693 = vrot.lane.b32.xlu0 %v5659_v3, %s5348_s26 }
 0x27b   : > { %687 = vrot.lane.b32.xlu1 %v5642_v59, %s5348_s26 }
 0x27d   : > { %697 = vrot.lane.b32.xlu0 %v5650_v61, %s5348_s26 }
 0x27f   : > { %675 = vrot.lane.b32.xlu1 %v5675_v8, %s5347_s19 }
 0x281   : > { %701 = vrot.lane.b32.xlu0 %v5663_v5, %s5348_s26 }
 0x283   : > { %695 = vrot.lane.b32.xlu1 %v5652_v63, %s5348_s26 }
 0x285   : > { %713 = vrot.lane.b32.xlu0 %v5640_v57, %s5349_s10 }
 0x287   : > { %691 = vrot.lane.b32.xlu1 %v5667_v6, %s5348_s26 }
 0x289   : > { %717 = vrot.lane.b32.xlu0 %v5659_v3, %s5349_s10 }
 0x28b   : > { %711 = vrot.lane.b32.xlu1 %v5642_v59, %s5349_s10 }
 0x28d   : > { %767 = vrot.lane.b32.xlu0 %v5642_v59, %s5350_s23 }
 0x28f   : > { %699 = vrot.lane.b32.xlu1 %v5675_v8, %s5348_s26  ;;  %s6533_s26 = scalar_lea.hbm %s6589_s8, %s4504_s5 }
 0x291   : > { %715 = vrot.lane.b32.xlu0 %v5667_v6, %s5349_s10 }
 0x293   : > { %769 = vrot.lane.b32.xlu1 %v5640_v57, %s5350_s23 }
 0x295   : > { %725 = vrot.lane.b32.xlu0 %v5663_v5, %s5349_s10 }
 0x297   : > { %721 = vrot.lane.b32.xlu1 %v5650_v61, %s5349_s10 }
 0x299   : > { %723 = vrot.lane.b32.xlu0 %v5675_v8, %s5349_s10 }
 0x29b   : > { %719 = vrot.lane.b32.xlu1 %v5652_v63, %s5349_s10  ;;  %s5267_s10 = scalar_lea.vmem %s6536_s16, 1024 }
 0x29c   : > { %p5268_p7 = scmp.ne.s32.totalorder %s6536_s16, %s5267_s10 }
 0x29d   : > { %948 = vrot.lane.b32.xlu0 %v5650_v61, %s5350_s23 }
 0x29e   : > { %p5269_p12 = pnand %p5268_p7, %p6644_p1 }
 0x29f   : > { %859 = vrot.lane.b32.xlu1 %v5659_v3, %s5350_s23 }
 0x2a0   : > { %p5270_p9 = pneg %p5269_p12 }
 0x2a1   : > { %1037 = vrot.lane.b32.xlu0 %v5663_v5, %s5350_s23 }
 0x2a3   : > { %857 = vrot.lane.b32.xlu1 %v5667_v6, %s5350_s23 }
 0x2a7   : > { %946 = vrot.lane.b32.xlu1 %v5652_v63, %s5350_s23 }
 0x2ab   : > { %1035 = vrot.lane.b32.xlu1 %v5675_v8, %s5350_s23 }
 0x2d7   : > { %v5708_v9 = vpop.permute.xlu0 %665 }
 0x2d8   : > { %1126 = vrot.lane.b32.xlu0 %v5708_v9, %s5350_s23  ;;  %v744_v54 = vmul.f32 0.35355338, %v5708_v9 }
 0x2d9   : > { %v5712_v10 = vpop.permute.xlu1 %663 }
 0x2da   : > { %1124 = vrot.lane.b32.xlu1 %v5712_v10, %s5350_s23  ;;  %v743_v29 = vmul.f32 0.35355338, %v5712_v10 }
 0x2df   : > { %v5716_v11 = vpop.permute.xlu0 %673 }
 0x2e0   : > { %v748_v60 = vmul.f32 0.35355338, %v5716_v11 }
 0x2e1   : > { %v5718_v12 = vpop.permute.xlu1 %671 }
 0x2e2   : > { %v747_v55 = vmul.f32 0.35355338, %v5718_v12 }
 0x2e3   : > { %v5720_v13 = vpop.permute.xlu0 %689 }
 0x2e4   : > { %v752_v4 = vmul.f32 0.35355338, %v5720_v13 }
 0x2e5   : > { %v5722_v14 = vpop.permute.xlu1 %669 }
 0x2e6   : > { %1215 = vrot.lane.b32.xlu0 %v5722_v14, %s5350_s23 }
 0x2e7   : > { %v5726_v15 = vpop.permute.xlu0 %677 }
 0x2e8   : > { %v750_v0 = vmul.f32 0.35355338, %v5726_v15 }
 0x2e9   : > { %v5728_v16 = vpop.permute.xlu1 %667 }
 0x2ea   : > { %1213 = vrot.lane.b32.xlu1 %v5728_v16, %s5350_s23  ;;  %1304 = vrot.lane.b32.xlu0 %v5716_v11, %s5350_s23  ;;  %v745_v38 = vmul.f32 0.35355338, %v5728_v16 }
 0x2eb   : > { %v5734_v17 = vpop.permute.xlu0 %693 }
 0x2ed   : > { %v5736_v18 = vpop.permute.xlu1 %687 }
 0x2ee   : > { %1302 = vrot.lane.b32.xlu1 %v5718_v12, %s5350_s23  ;;  %1393 = vrot.lane.b32.xlu0 %v5726_v15, %s5350_s23 }
 0x2ef   : > { %v5742_v19 = vpop.permute.xlu0 %697 }
 0x2f1   : > { %v5744_v22 = vpop.permute.xlu1 %675 }
 0x2f2   : > { %1391 = vrot.lane.b32.xlu1 %v5744_v22, %s5350_s23  ;;  %1482 = vrot.lane.b32.xlu0 %v5720_v13, %s5350_s23  ;;  %v749_v49 = vmul.f32 0.35355338, %v5744_v22 }
 0x2f3   : > { %v5750_v23 = vpop.permute.xlu0 %701 }
 0x2f5   : > { %v5752_v24 = vpop.permute.xlu1 %695 }
 0x2f6   : > { %1480 = vrot.lane.b32.xlu1 %v5736_v18, %s5350_s23  ;;  %1571 = vrot.lane.b32.xlu0 %v5734_v17, %s5350_s23  ;;  %v755_v7 = vmul.f32 0.35355338, %v5752_v24 }
 0x2f7   : > { %v5758_v25 = vpop.permute.xlu0 %713 }
 0x2f9   : > { %v5760_v26 = vpop.permute.xlu1 %691 }
 0x2fa   : > { %1569 = vrot.lane.b32.xlu1 %v5760_v26, %s5350_s23  ;;  %1660 = vrot.lane.b32.xlu0 %v5742_v19, %s5350_s23 }
 0x2fb   : > { %v5766_v27 = vpop.permute.xlu0 %717 }
 0x2fd   : > { %v5768_v30 = vpop.permute.xlu1 %711 }
 0x2fe   : > { %1658 = vrot.lane.b32.xlu1 %v5752_v24, %s5350_s23  ;;  %1749 = vrot.lane.b32.xlu0 %v5750_v23, %s5350_s23 }
 0x2ff   : > { %v768_v31 = vpop.permute.xlu0 %767 }
 0x301   : > { %v5774_v32 = vpop.permute.xlu1 %699 }
 0x302   : > { %1747 = vrot.lane.b32.xlu1 %v5774_v32, %s5350_s23  ;;  %1838 = vrot.lane.b32.xlu0 %v5758_v25, %s5350_s23 }
 0x303   : > { %v5780_v33 = vpop.permute.xlu0 %715 }
 0x305   : > { %v770_v34 = vpop.permute.xlu1 %769 }
 0x306   : > { %1836 = vrot.lane.b32.xlu1 %v5768_v30, %s5350_s23  ;;  %4677 = vmatprep.subr.msk.mxu1 %vm771_vm1, %v770_v34 }
 0x307   : > { %1927 = vrot.lane.b32.xlu0 %v5766_v27, %s5350_s23  ;;  %4678 = vmatpush3.xpose.msk.msra.mxu1 %vm771_vm1, %v770_v34  ;;  %v5788_v35 = vpop.permute.xlu0 %725 }
 0x308   : > { %4679 = vmatprep.subr.msk.mxu1 %vm771_vm1, %v768_v31 }
 0x309   : > { %v5791_v36 = vpop.permute.xlu1 %721 }
 0x30a   : > { %1925 = vrot.lane.b32.xlu1 %v5780_v33, %s5350_s23 }
 0x30b   : > { %2016 = vrot.lane.b32.xlu0 %v5791_v36, %s5350_s23  ;;  %4680 = vmatpush3.xpose.msk.msra.mxu1 %vm771_vm1, %v768_v31  ;;  %v5798_v37 = vpop.permute.xlu0 %723 }
 0x30d   : > { %v5801_v40 = vpop.permute.xlu1 %719 }
 0x30e   : > { %4682 = vmatmul.mubr.msk.f32.vlgmr.msra.gmra.mxu1 %vm771_vm1, %v736_v20  ;;  %2014 = vrot.lane.b32.xlu1 %v5801_v40, %s5350_s23  ;;  %v766_v20 = vmul.f32 0.35355338, %v5788_v35 }
 0x30f   : > { %2105 = vrot.lane.b32.xlu0 %v5788_v35, %s5350_s23  ;;  %4688 = vmatprep.mubr.msk.f32.mxu1 %vm771_vm1, %v737_v41  ;;  %v949_v42 = vpop.permute.xlu0 %948 }
 0x310   : > { %4691 = vmatprep.subr.msk.mxu0 %vm771_vm1, %v949_v42 }
 0x311   : > { %v860_v43 = vpop.permute.xlu1 %859  ;;  %4692 = vmatpush3.xpose.msk.msra.mxu0 %vm771_vm1, %v949_v42 }
 0x312   : > { %4684 = vmatprep.subr.msk.mxu1 %vm771_vm1, %v860_v43  ;;  %2103 = vrot.lane.b32.xlu1 %v5798_v37, %s5350_s23  ;;  %s5355_s23 = smov [#allocation10]  }
 0x313   : > { %2587 = vrot.lane.b32.xlu0 %v5640_v57, %s5351_s14  ;;  %4685 = vmatpush3.xpose.msk.msra.mxu1 %vm771_vm1, %v860_v43  ;;  %v1038_v28 = vpop.permute.xlu0 %1037  ;;  %v746_v57 = vmul.f32 0.35355338, %v5722_v14 }
 0x315   : > { %v858_v44 = vpop.permute.xlu1 %857 }
 0x316   : > { %4686 = vmatprep.subr.msk.mxu1 %vm771_vm1, %v858_v44  ;;  %2585 = vrot.lane.b32.xlu1 %v5642_v59, %s5351_s14 }
 0x317   : > { %2674 = vrot.lane.b32.xlu0 %v5659_v3, %s5351_s14  ;;  %4687 = vmatpush3.xpose.msk.msra.mxu1 %vm771_vm1, %v858_v44  ;;  %v753_v3 = vmul.f32 0.35355338, %v5760_v26 }
 0x318   : > { %4698 = vmatprep.subr.msk.mxu1 %vm771_vm1, %v1038_v28 }
 0x319   : > { %v947_v45 = vpop.permute.xlu1 %946 }
 0x31a   : > { %4689 = vmatmul.mubr.msk.f32.vlgmr.msra.gmra.mxu1 %vm771_vm1, %v738_v21  ;;  %2761 = vrot.lane.b32.xlu1 %v5650_v61, %s5351_s14  ;;  %v751_v61 = vmul.f32 0.35355338, %v5736_v18  ;;  %v2193_v21 = vld [vmem:[#allocation8 + $0x8] sm:$0xff] }
 0x31b   : > { %2848 = vrot.lane.b32.xlu0 %v5663_v5, %s5351_s14  ;;  %4693 = vmatprep.subr.msk.mxu0 %vm771_vm1, %v947_v45 }
 0x31c   : > { %4694 = vmatpush3.xpose.msk.msra.mxu0 %vm771_vm1, %v947_v45  ;;  %4699 = vmatpush3.xpose.msk.msra.mxu1 %vm771_vm1, %v1038_v28 }
 0x31d   : > { %4702 = vmatprep.mubr.msk.f32.mxu1 %vm771_vm1, %v741_v46  ;;  %v1036_v47 = vpop.permute.xlu1 %1035  ;;  %v2192_v46 = vld [vmem:[#allocation8] sm:$0xff] }
 0x31e   : > { %2672 = vrot.lane.b32.xlu1 %v5667_v6, %s5351_s14  ;;  %4700 = vmatprep.subr.msk.mxu1 %vm771_vm1, %v1036_v47 }
 0x31f   : > { %2846 = vrot.lane.b32.xlu0 %v5675_v8, %s5351_s14  ;;  %4696 = vmatmul.mubr.msk.f32.vlgmr.msra.gmra.mxu0 %vm771_vm1, %v740_v50  ;;  %v754_v8 = vmul.f32 0.35355338, %v5734_v17 }
 0x320   : > { %4701 = vmatpush3.xpose.msk.msra.mxu1 %vm771_vm1, %v1036_v47  ;;  %4709 = vmatprep.mubr.msk.f32.mxu0 %vm771_vm1, %v743_v29 }
 0x322   : > { %2759 = vrot.lane.b32.xlu1 %v5652_v63, %s5351_s14 }
 0x323   : > { %3022 = vrot.lane.b32.xlu0 %v5722_v14, %s5351_s14  ;;  %4703 = vmatmul.mubr.msk.f32.vlgmr.msra.gmra.mxu1 %vm771_vm1, %v742_v51 }
 0x324   : > { %4716 = vmatprep.mubr.msk.f32.mxu1 %vm771_vm1, %v745_v38 }
 0x326   : > { %2935 = vrot.lane.b32.xlu1 %v5708_v9, %s5351_s14 }
 0x327   : > { %3196 = vrot.lane.b32.xlu0 %v5726_v15, %s5351_s14  ;;  %v759_v15 = vmul.f32 0.35355338, %v5768_v30 }
 0x32a   : > { %2933 = vrot.lane.b32.xlu1 %v5712_v10, %s5351_s14 }
 0x32b   : > { %3370 = vrot.lane.b32.xlu0 %v5734_v17, %s5351_s14 }
 0x32e   : > { %3109 = vrot.lane.b32.xlu1 %v5716_v11, %s5351_s14  ;;  %v757_v11 = vmul.f32 0.35355338, %v5774_v32 }
 0x32f   : > { %3544 = vrot.lane.b32.xlu0 %v5750_v23, %s5351_s14 }
 0x332   : > { %3107 = vrot.lane.b32.xlu1 %v5718_v12, %s5351_s14  ;;  %v756_v12 = vmul.f32 0.35355338, %v5742_v19 }
 0x333   : > { %3718 = vrot.lane.b32.xlu0 %v5766_v27, %s5351_s14 }
 0x336   : > { %3283 = vrot.lane.b32.xlu1 %v5720_v13, %s5351_s14 }
 0x337   : > { %3020 = vrot.lane.b32.xlu0 %v5728_v16, %s5351_s14  ;;  %v758_v16 = vmul.f32 0.35355338, %v5750_v23 }
 0x33a   : > { %3281 = vrot.lane.b32.xlu1 %v5736_v18, %s5351_s14 }
 0x33b   : > { %3194 = vrot.lane.b32.xlu0 %v5744_v22, %s5351_s14  ;;  %v760_v22 = vmul.f32 0.35355338, %v5758_v25 }
 0x33e   : > { %3457 = vrot.lane.b32.xlu1 %v5742_v19, %s5351_s14  ;;  %v761_v19 = vmul.f32 0.35355338, %v5780_v33 }
 0x33f   : > { %3368 = vrot.lane.b32.xlu0 %v5760_v26, %s5351_s14  ;;  %v763_v26 = vmul.f32 0.35355338, %v5801_v40 }
 0x342   : > { %3455 = vrot.lane.b32.xlu1 %v5752_v24, %s5351_s14 }
 0x343   : > { %3542 = vrot.lane.b32.xlu0 %v5774_v32, %s5351_s14  ;;  %v765_v32 = vmul.f32 0.35355338, %v5798_v37 }
 0x346   : > { %3631 = vrot.lane.b32.xlu1 %v5758_v25, %s5351_s14 }
 0x34a   : > { %3629 = vrot.lane.b32.xlu1 %v5768_v30, %s5351_s14  ;;  %v1127_v52 = vpop.permute.xlu0 %1126  ;;  %v762_v30 = vmul.f32 0.35355338, %v5766_v27 }
 0x34b   : > { %4705 = vmatprep.subr.msk.mxu0 %vm771_vm1, %v1127_v52 }
 0x34c   : > { %v1125_v53 = vpop.permute.xlu1 %1124  ;;  %4706 = vmatpush3.xpose.msk.msra.mxu0 %vm771_vm1, %v1127_v52 }
 0x34d   : > { %4707 = vmatprep.subr.msk.mxu0 %vm771_vm1, %v1125_v53 }
 0x34e   : > { %3716 = vrot.lane.b32.xlu1 %v5780_v33, %s5351_s14  ;;  %v764_v33 = vmul.f32 0.35355338, %v5791_v36 }
 0x350   : > { %4708 = vmatpush3.xpose.msk.msra.mxu0 %vm771_vm1, %v1125_v53 }
 0x353   : > { %4710 = vmatmul.mubr.msk.f32.vlgmr.msra.gmra.mxu0 %vm771_vm1, %v744_v54 }
 0x354   : > { %4723 = vmatprep.mubr.msk.f32.mxu0 %vm771_vm1, %v747_v55 }
 0x358   : > { %v1216_v39 = vpop.permute.xlu0 %1215 }
 0x359   : > { %4712 = vmatprep.subr.msk.mxu1 %vm771_vm1, %v1216_v39 }
 0x35a   : > { %4713 = vmatpush3.xpose.msk.msra.mxu1 %vm771_vm1, %v1216_v39 }
 0x35c   : > { %v1214_v48 = vpop.permute.xlu1 %1213  ;;  %v1305_v56 = vpop.permute.xlu0 %1304 }
 0x35d   : > { %4714 = vmatprep.subr.msk.mxu1 %vm771_vm1, %v1214_v48  ;;  %4719 = vmatprep.subr.msk.mxu0 %vm771_vm1, %v1305_v56 }
 0x35e   : > { %4715 = vmatpush3.xpose.msk.msra.mxu1 %vm771_vm1, %v1214_v48  ;;  %4720 = vmatpush3.xpose.msk.msra.mxu0 %vm771_vm1, %v1305_v56 }
 0x360   : > { %v1303_v58 = vpop.permute.xlu1 %1302  ;;  %v1394_v59 = vpop.permute.xlu0 %1393 }
 0x361   : > { %4717 = vmatmul.mubr.msk.f32.vlgmr.msra.gmra.mxu1 %vm771_vm1, %v746_v57  ;;  %4721 = vmatprep.subr.msk.mxu0 %vm771_vm1, %v1303_v58 }
 0x362   : > { %4726 = vmatprep.subr.msk.mxu1 %vm771_vm1, %v1394_v59  ;;  %4722 = vmatpush3.xpose.msk.msra.mxu0 %vm771_vm1, %v1303_v58 }
 0x363   : > { %4727 = vmatpush3.xpose.msk.msra.mxu1 %vm771_vm1, %v1394_v59  ;;  %4730 = vmatprep.mubr.msk.f32.mxu1 %vm771_vm1, %v749_v49 }
 0x364   : > { %v1392_v62 = vpop.permute.xlu1 %1391  ;;  %v1483_v63 = vpop.permute.xlu0 %1482 }
 0x365   : > { %4724 = vmatmul.mubr.msk.f32.vlgmr.msra.gmra.mxu0 %vm771_vm1, %v748_v60  ;;  %4728 = vmatprep.subr.msk.mxu1 %vm771_vm1, %v1392_v62 }
 0x366   : > { %4733 = vmatprep.subr.msk.mxu0 %vm771_vm1, %v1483_v63  ;;  %4737 = vmatprep.mubr.msk.f32.mxu0 %vm771_vm1, %v751_v61 }
 0x367   : > { %4729 = vmatpush3.xpose.msk.msra.mxu1 %vm771_vm1, %v1392_v62  ;;  %4734 = vmatpush3.xpose.msk.msra.mxu0 %vm771_vm1, %v1483_v63 }
 0x368   : > { %v1481_v1 = vpop.permute.xlu1 %1480  ;;  %v1572_v2 = vpop.permute.xlu0 %1571 }
 0x369   : > { %4735 = vmatprep.subr.msk.mxu0 %vm771_vm1, %v1481_v1  ;;  %4740 = vmatprep.subr.msk.mxu1 %vm771_vm1, %v1572_v2 }
 0x36a   : > { %4731 = vmatmul.mubr.msk.f32.vlgmr.msra.gmra.mxu1 %vm771_vm1, %v750_v0 }
 0x36b   : > { %4736 = vmatpush3.xpose.msk.msra.mxu0 %vm771_vm1, %v1481_v1  ;;  %4741 = vmatpush3.xpose.msk.msra.mxu1 %vm771_vm1, %v1572_v2 }
 0x36c   : > { %4744 = vmatprep.mubr.msk.f32.mxu1 %vm771_vm1, %v753_v3  ;;  %v1570_v5 = vpop.permute.xlu1 %1569  ;;  %v1661_v6 = vpop.permute.xlu0 %1660  ;;  %v2195_v3 = vld [vmem:[#allocation8 + $0x18] sm:$0xff] }
 0x36d   : > { %4742 = vmatprep.subr.msk.mxu1 %vm771_vm1, %v1570_v5  ;;  %4747 = vmatprep.subr.msk.mxu0 %vm771_vm1, %v1661_v6 }
 0x36e   : > { %4738 = vmatmul.mubr.msk.f32.vlgmr.msra.gmra.mxu0 %vm771_vm1, %v752_v4 }
 0x36f   : > { %4743 = vmatpush3.xpose.msk.msra.mxu1 %vm771_vm1, %v1570_v5  ;;  %4748 = vmatpush3.xpose.msk.msra.mxu0 %vm771_vm1, %v1661_v6  ;;  %v2194_v5 = vld [vmem:[#allocation8 + $0x10] sm:$0xff] }
 0x370   : > { %4751 = vmatprep.mubr.msk.f32.mxu0 %vm771_vm1, %v755_v7  ;;  %v1659_v9 = vpop.permute.xlu1 %1658  ;;  %v1750_v10 = vpop.permute.xlu0 %1749 }
 0x371   : > { %4749 = vmatprep.subr.msk.mxu0 %vm771_vm1, %v1659_v9  ;;  %4754 = vmatprep.subr.msk.mxu1 %vm771_vm1, %v1750_v10 }
 0x372   : > { %4745 = vmatmul.mubr.msk.f32.vlgmr.msra.gmra.mxu1 %vm771_vm1, %v754_v8 }
 0x373   : > { %4750 = vmatpush3.xpose.msk.msra.mxu0 %vm771_vm1, %v1659_v9  ;;  %4755 = vmatpush3.xpose.msk.msra.mxu1 %vm771_vm1, %v1750_v10 }
 0x374   : > { %4758 = vmatprep.mubr.msk.f32.mxu1 %vm771_vm1, %v757_v11  ;;  %v1748_v13 = vpop.permute.xlu1 %1747  ;;  %v1839_v14 = vpop.permute.xlu0 %1838 }
 0x375   : > { %4756 = vmatprep.subr.msk.mxu1 %vm771_vm1, %v1748_v13  ;;  %4761 = vmatprep.subr.msk.mxu0 %vm771_vm1, %v1839_v14 }
 0x376   : > { %4752 = vmatmul.mubr.msk.f32.vlgmr.msra.gmra.mxu0 %vm771_vm1, %v756_v12 }
 0x377   : > { %4757 = vmatpush3.xpose.msk.msra.mxu1 %vm771_vm1, %v1748_v13  ;;  %4762 = vmatpush3.xpose.msk.msra.mxu0 %vm771_vm1, %v1839_v14 }
 0x378   : > { %4765 = vmatprep.mubr.msk.f32.mxu0 %vm771_vm1, %v759_v15  ;;  %v1837_v17 = vpop.permute.xlu1 %1836 }
 0x379   : > { %v1928_v18 = vpop.permute.xlu0 %1927  ;;  %4763 = vmatprep.subr.msk.mxu0 %vm771_vm1, %v1837_v17 }
 0x37a   : > { %4759 = vmatmul.mubr.msk.f32.vlgmr.msra.gmra.mxu1 %vm771_vm1, %v758_v16  ;;  %4768 = vmatprep.subr.msk.mxu1 %vm771_vm1, %v1928_v18 }
 0x37b   : > { %4764 = vmatpush3.xpose.msk.msra.mxu0 %vm771_vm1, %v1837_v17  ;;  %4769 = vmatpush3.xpose.msk.msra.mxu1 %vm771_vm1, %v1928_v18 }
 0x37c   : > { %4772 = vmatprep.mubr.msk.f32.mxu1 %vm771_vm1, %v761_v19  ;;  %v1926_v23 = vpop.permute.xlu1 %1925 }
 0x37d   : > { %v2017_v24 = vpop.permute.xlu0 %2016  ;;  %4770 = vmatprep.subr.msk.mxu1 %vm771_vm1, %v1926_v23 }
 0x37e   : > { %4766 = vmatmul.mubr.msk.f32.vlgmr.msra.gmra.mxu0 %vm771_vm1, %v760_v22  ;;  %4775 = vmatprep.subr.msk.mxu0 %vm771_vm1, %v2017_v24 }
 0x37f   : > { %4771 = vmatpush3.xpose.msk.msra.mxu1 %vm771_vm1, %v1926_v23  ;;  %4776 = vmatpush3.xpose.msk.msra.mxu0 %vm771_vm1, %v2017_v24 }
 0x380   : > { %4779 = vmatprep.mubr.msk.f32.mxu0 %vm771_vm1, %v763_v26  ;;  %v2015_v25 = vpop.permute.xlu1 %2014 }
 0x381   : > { %v2106_v31 = vpop.permute.xlu0 %2105  ;;  %4777 = vmatprep.subr.msk.mxu0 %vm771_vm1, %v2015_v25 }
 0x382   : > { %4773 = vmatmul.mubr.msk.f32.vlgmr.msra.gmra.mxu1 %vm771_vm1, %v762_v30  ;;  %4782 = vmatprep.subr.msk.mxu1 %vm771_vm1, %v2106_v31 }
 0x383   : > { %4778 = vmatpush3.xpose.msk.msra.mxu0 %vm771_vm1, %v2015_v25  ;;  %4783 = vmatpush3.xpose.msk.msra.mxu1 %vm771_vm1, %v2106_v31 }
 0x384   : > { %4786 = vmatprep.mubr.msk.f32.mxu1 %vm771_vm1, %v765_v32  ;;  %v2104_v27 = vpop.permute.xlu1 %2103 }
 0x385   : > { %v2588_v34 = vpop.permute.xlu0 %2587  ;;  %4784 = vmatprep.subr.msk.mxu1 %vm771_vm1, %v2104_v27 }
 0x386   : > { %4780 = vmatmul.mubr.msk.f32.vlgmr.msra.gmra.mxu0 %vm771_vm1, %v764_v33  ;;  %4789 = vmatprep.subr.mxu0 %v2588_v34 }
 0x387   : > { %4785 = vmatpush3.xpose.msk.msra.mxu1 %vm771_vm1, %v2104_v27  ;;  %4790 = vmatpush3.msra.mxu0 %v2588_v34 }
 0x388   : > { %v2586_v41 = vpop.permute.xlu1 %2585 }
 0x389   : > { %v2675_v42 = vpop.permute.xlu0 %2674  ;;  %4791 = vmatprep.subr.mxu0 %v2586_v41 }
 0x38a   : > { %4787 = vmatmul.mubr.msk.f32.vlgmr.msra.gmra.mxu1 %vm771_vm1, %v766_v20  ;;  %4796 = vmatprep.subr.mxu1 %v2675_v42 }
 0x38b   : > { %4792 = vmatpush3.msra.mxu0 %v2586_v41  ;;  %4797 = vmatpush3.msra.mxu1 %v2675_v42  ;;  %v2197_v41 = vld [vmem:[#allocation8 + $0x28] sm:$0xff] }
 0x38c   : > { %v5984_v43 = vpop.permute.xlu1 %2761 }
 0x38d   : > { %4803 = vmatprep.subr.mxu0 %v5984_v43  ;;  %v5987_v28 = vpop.permute.xlu0 %2848 }
 0x390   : > { %v2673_v44 = vpop.permute.xlu1 %2672 }
 0x391   : > { %4798 = vmatprep.subr.mxu1 %v2673_v44  ;;  %v6038_v16 = vpop.permute.xlu0 %2846 }
 0x392   : > { %4799 = vmatpush3.msra.mxu1 %v2673_v44 }
 0x393   : > { %4810 = vmatprep.subr.mxu1 %v5987_v28 }
 0x394   : > { %v6024_v7 = vpop.permute.xlu1 %2759 }
 0x395   : > { %v6054_v32 = vpop.permute.xlu0 %3022 }
 0x398   : > { %v6032_v12 = vpop.permute.xlu1 %2935 }
 0x39c   : > { %v6034_v13 = vpop.permute.xlu1 %2933 }
 0x3a0   : > { %v6046_v24 = vpop.permute.xlu1 %3109 }
 0x3a4   : > { %v6060_v42 = vpop.permute.xlu1 %3107 }
 0x3ce   : > { %v4683_v45 = vpop.f32.mrf.mxu1 }
 0x3cf   : > { %v5990_v47 = vadd.f32 %v4683_v45, %v2193_v21 }
 0x3d0   : > { %v848_v50 = vpop.f32.mrf.mxu1 }
 0x3d1   : > { %v5992_v29 = vadd.f32 %v2192_v46, %v848_v50  ;;  %v2236_v51 = vsel %vm2232_vm2, %v5990_v47, -inf  ;;  %v6066_v50 = vpop.permute.xlu0 %3196 }
 0x3d2   : > { %2237 = vmax.xlane.f32.xlu1 %v2236_v51 }
 0x3d3   : > { %v2233_v38 = vsel %vm2232_vm2, %v5992_v29, -inf }
 0x3d4   : > { %2234 = vmax.xlane.f32.xlu0 %v2233_v38 }
 0x3da   : > { %v4690_v54 = vpop.f32.mrf.mxu1 }
 0x3db   : > { %v6004_v56 = vadd.f32 %v4690_v54, %v2193_v21 }
 0x3dc   : > { %v937_v58 = vpop.f32.mrf.mxu1 }
 0x3dd   : > { %v6008_v59 = vadd.f32 %v2192_v46, %v937_v58  ;;  %v2242_v49 = vsel %vm2232_vm2, %v6004_v56, -inf }
 0x3df   : > { %v4697_v52 = vpop.f32.mrf.mxu0  ;;  %v2239_v62 = vsel %vm2232_vm2, %v6008_v59, -inf }
 0x3e0   : > { %v5998_v53 = vadd.f32 %v4697_v52, %v2193_v21 }
 0x3e1   : > { %v1026_v55 = vpop.f32.mrf.mxu0 }
 0x3e2   : > { %v6000_v39 = vadd.f32 %v2192_v46, %v1026_v55  ;;  %v2248_v48 = vsel %vm2232_vm2, %v5998_v53, -inf }
 0x3e3   : > { %2249 = vmax.xlane.f32.xlu1 %v2248_v48  ;;  %v4704_v60 = vpop.f32.mrf.mxu1 }
 0x3e4   : > { %v2245_v57 = vsel %vm2232_vm2, %v6000_v39, -inf  ;;  %v6012_v61 = vadd.f32 %v4704_v60, %v2193_v21  ;;  %v6080_v60 = vpop.permute.xlu0 %3370 }
 0x3e5   : > { %2246 = vmax.xlane.f32.xlu0 %v2245_v57  ;;  %v1115_v63 = vpop.f32.mrf.mxu1  ;;  %v6076_v57 = vpop.permute.xlu1 %3283 }
 0x3e6   : > { %v6016_v0 = vadd.f32 %v2192_v46, %v1115_v63  ;;  %v2254_v1 = vsel %vm2232_vm2, %v6012_v61, -inf  ;;  %v2196_v46 = vld [vmem:[#allocation8 + $0x20] sm:$0xff] }
 0x3e8   : > { %v2251_v2 = vsel %vm2232_vm2, %v6016_v0, -inf }
 0x3e9   : > { %2243 = vmax.xlane.f32.xlu0 %v2242_v49 }
 0x3ed   : > { %2240 = vmax.xlane.f32.xlu0 %v2239_v62 }
 0x3f1   : > { %2255 = vmax.xlane.f32.xlu0 %v2254_v1 }
 0x3f5   : > { %2252 = vmax.xlane.f32.xlu0 %v2251_v2 }
 0x413   : > { %v4711_v4 = vpop.f32.mrf.mxu0 }
 0x414   : > { %v6022_v6 = vadd.f32 %v4711_v4, %v2195_v3 }
 0x415   : > { %v1204_v8 = vpop.f32.mrf.mxu0 }
 0x416   : > { %v6026_v9 = vadd.f32 %v2194_v5, %v1204_v8  ;;  %v2260_v10 = vsel %vm2232_vm2, %v6022_v6, -inf }
 0x417   : > { %2261 = vmax.xlane.f32.xlu1 %v2260_v10 }
 0x418   : > { %v2257_v11 = vsel %vm2232_vm2, %v6026_v9, -inf }
 0x41b   : > { %2258 = vmax.xlane.f32.xlu1 %v2257_v11 }
 0x421   : > { %v4718_v14 = vpop.f32.mrf.mxu1 }
 0x422   : > { %v6036_v15 = vadd.f32 %v4718_v14, %v2195_v3 }
 0x423   : > { %v1293_v17 = vpop.f32.mrf.mxu1 }
 0x424   : > { %v6040_v18 = vadd.f32 %v2194_v5, %v1293_v17  ;;  %v2266_v19 = vsel %vm2232_vm2, %v6036_v15, -inf  ;;  %v6098_v17 = vpop.permute.xlu0 %3544 }
 0x425   : > { %2267 = vmax.xlane.f32.xlu0 %v2266_v19  ;;  %v4725_v22 = vpop.f32.mrf.mxu0  ;;  %6625 = vst [vmem:[#allocation16_spill] sm:$0xff] %v6098_v17 }
 0x426   : > { %v6044_v23 = vadd.f32 %v4725_v22, %v2195_v3  ;;  %v2263_v25 = vsel %vm2232_vm2, %v6040_v18, -inf }
 0x427   : > { %v1382_v26 = vpop.f32.mrf.mxu0 }
 0x428   : > { %v6048_v30 = vadd.f32 %v2194_v5, %v1382_v26  ;;  %v2272_v31 = vsel %vm2232_vm2, %v6044_v23, -inf  ;;  %v6102_v26 = vld [vmem:[#allocation8 + $0x38] sm:$0xff] }
 0x429   : > { %2264 = vmax.xlane.f32.xlu0 %v2263_v25  ;;  %2273 = vmax.xlane.f32.xlu1 %v2272_v31 }
 0x42a   : > { %v4732_v33 = vpop.f32.mrf.mxu1  ;;  %v2269_v20 = vsel %vm2232_vm2, %v6048_v30, -inf }
 0x42b   : > { %v6056_v27 = vadd.f32 %v4732_v33, %v2195_v3 }
 0x42c   : > { %v1471_v34 = vpop.f32.mrf.mxu1 }
 0x42d   : > { %v6062_v44 = vadd.f32 %v2194_v5, %v1471_v34  ;;  %2270 = vmax.xlane.f32.xlu1 %v2269_v20  ;;  %v2278_v21 = vsel %vm2232_vm2, %v6056_v27, -inf  ;;  %v6090_v5 = vpop.permute.xlu1 %3281  ;;  %v2198_v20 = vld [vmem:[#allocation8 + $0x30] sm:$0xff] }
 0x42e   : > { %2279 = vmax.xlane.f32.xlu0 %v2278_v21  ;;  %v4739_v45 = vpop.f32.mrf.mxu0  ;;  %6624 = vst [vmem:[#allocation15_spill] sm:$0xff] %v6090_v5 }
 0x42f   : > { %v6068_v51 = vadd.f32 %v4739_v45, %v2197_v41  ;;  %v2275_v54 = vsel %vm2232_vm2, %v6062_v44, -inf }
 0x430   : > { %v1560_v38 = vpop.f32.mrf.mxu0 }
 0x431   : > { %v6070_v52 = vadd.f32 %v2196_v46, %v1560_v38  ;;  %v2284_v55 = vsel %vm2232_vm2, %v6068_v51, -inf  ;;  %v6110_v21 = vpop.permute.xlu1 %3457  ;;  %v6115_v38 = vpop.permute.xlu0 %3718 }
 0x432   : > { %2276 = vmax.xlane.f32.xlu0 %v2275_v54  ;;  %2285 = vmax.xlane.f32.xlu1 %v2284_v55  ;;  %v4746_v48 = vpop.f32.mrf.mxu1  ;;  %6626 = vst [vmem:[#allocation17_spill] sm:$0xff] %v6110_v21  ;;  %6627 = vst [vmem:[#allocation18_spill] sm:$0xff] %v6115_v38 }
 0x433   : > { %v6078_v58 = vadd.f32 %v4746_v48, %v2197_v41  ;;  %v2281_v63 = vsel %vm2232_vm2, %v6070_v52, -inf }
 0x434   : > { %v1649_v49 = vpop.f32.mrf.mxu1 }
 0x435   : > { %v6082_v62 = vadd.f32 %v2196_v46, %v1649_v49  ;;  %v2290_v1 = vsel %vm2232_vm2, %v6078_v58, -inf }
 0x436   : > { %2282 = vmax.xlane.f32.xlu1 %v2281_v63  ;;  %2291 = vmax.xlane.f32.xlu0 %v2290_v1  ;;  %v4753_v2 = vpop.f32.mrf.mxu0  ;;  %v6123_v63 = vpop.permute.xlu1 %3455 }
 0x437   : > { %v6088_v3 = vadd.f32 %v4753_v2, %v2197_v41  ;;  %v2287_v10 = vsel %vm2232_vm2, %v6082_v62, -inf  ;;  %6628 = vst [vmem:[#allocation19_spill] sm:$0xff] %v6123_v63 }
 0x438   : > { %v1738_v4 = vpop.f32.mrf.mxu0 }
 0x439   : > { %v6092_v8 = vadd.f32 %v2196_v46, %v1738_v4  ;;  %v2296_v11 = vsel %vm2232_vm2, %v6088_v3, -inf }
 0x43a   : > { %2288 = vmax.xlane.f32.xlu0 %v2287_v10  ;;  %2297 = vmax.xlane.f32.xlu1 %v2296_v11  ;;  %v4760_v14 = vpop.f32.mrf.mxu1  ;;  %v6132_v11 = vpop.permute.xlu0 %3020 }
 0x43b   : > { %v6100_v19 = vadd.f32 %v4760_v14, %v2197_v41  ;;  %v2293_v31 = vsel %vm2232_vm2, %v6092_v8, -inf }
 0x43c   : > { %v1827_v22 = vpop.f32.mrf.mxu1 }
 0x43d   : > { %v6104_v25 = vadd.f32 %v2196_v46, %v1827_v22  ;;  %v2302_v33 = vsel %vm2232_vm2, %v6100_v19, -inf }
 0x43e   : > { %2294 = vmax.xlane.f32.xlu1 %v2293_v31  ;;  %2303 = vmax.xlane.f32.xlu0 %v2302_v33  ;;  %v4767_v34 = vpop.f32.mrf.mxu0 }
 0x43f   : > { %v6113_v41 = vadd.f32 %v4767_v34, %v6102_v26  ;;  %v2299_v54 = vsel %vm2232_vm2, %v6104_v25, -inf }
 0x440   : > { %v1916_v45 = vpop.f32.mrf.mxu0 }
 0x441   : > { %v6117_v46 = vadd.f32 %v2198_v20, %v1916_v45  ;;  %v2308_v55 = vsel %vm2232_vm2, %v6113_v41, -inf  ;;  %v6143_v45 = vpop.permute.xlu1 %3631 }
 0x442   : > { %2300 = vmax.xlane.f32.xlu0 %v2299_v54  ;;  %2309 = vmax.xlane.f32.xlu1 %v2308_v55  ;;  %v4774_v48 = vpop.f32.mrf.mxu1  ;;  %6629 = vst [vmem:[#allocation20_spill] sm:$0xff] %v6143_v45  ;;  %v6147_v55 = vpop.permute.xlu0 %3194 }
 0x443   : > { %v6126_v1 = vadd.f32 %v4774_v48, %v6102_v26  ;;  %v2305_v4 = vsel %vm2232_vm2, %v6117_v46, -inf }
 0x444   : > { %v2005_v49 = vpop.f32.mrf.mxu1 }
 0x445   : > { %v6128_v2 = vadd.f32 %v2198_v20, %v2005_v49  ;;  %v2314_v34 = vsel %vm2232_vm2, %v6126_v1, -inf  ;;  %v6151_v49 = vpop.permute.xlu1 %3629 }
 0x446   : > { %2306 = vmax.xlane.f32.xlu1 %v2305_v4  ;;  %v4781_v10 = vpop.f32.mrf.mxu0  ;;  %6630 = vst [vmem:[#allocation21_spill] sm:$0xff] %v6151_v49  ;;  %v6153_v4 = vpop.permute.xlu0 %3368 }
 0x447   : > { %v2311_v14 = vsel %vm2232_vm2, %v6128_v2, -inf  ;;  %v6137_v31 = vadd.f32 %v4781_v10, %v6102_v26  ;;  %6631 = vst [vmem:[#allocation22_spill] sm:$0xff] %v6153_v4 }
 0x448   : > { %2312 = vmax.xlane.f32.xlu0 %v2311_v14  ;;  %v2094_v22 = vpop.f32.mrf.mxu0 }
 0x449   : > { %v6139_v33 = vadd.f32 %v2198_v20, %v2094_v22  ;;  %v2320_v48 = vsel %vm2232_vm2, %v6137_v31, -inf  ;;  %v6155_v10 = vpop.permute.xlu1 %3716 }
 0x44a   : > { %2315 = vmax.xlane.f32.xlu1 %v2314_v34  ;;  %6632 = vst [vmem:[#allocation23_spill] sm:$0xff] %v6155_v10  ;;  %v6157_v14 = vpop.permute.xlu0 %3542  ;;  %v4788_v17 = vpop.f32.mrf.mxu1 }
 0x44b   : > { %v2317_v54 = vsel %vm2232_vm2, %v6139_v33, -inf  ;;  %6633 = vst [vmem:[#allocation24_spill] sm:$0xff] %v6157_v14 }
 0x44c   : > { %2318 = vmax.xlane.f32.xlu0 %v2317_v54  ;;  %v2183_v49 = vpop.f32.mrf.mxu1 }
 0x44e   : > { %2321 = vmax.xlane.f32.xlu1 %v2320_v48 }
 0x45b   : > { %v2238_v22 = vpop.xlane.xlu1 %2237 }
 0x45c   : > { %v2330_v34 = vsub.f32 %v5990_v47, %v2238_v22 }
 0x45d   : > { %v2235_v38 = vpop.xlane.xlu0 %2234 }
 0x45e   : > { %v2363_v45 = vmul.f32 1.442695, %v2330_v34  ;;  %v2329_v54 = vsub.f32 %v5992_v29, %v2235_v38  ;;  %v6169_v29 = vadd.f32 %v2198_v20, %v2183_v49 }
 0x460   : > { %5033 = vpow2.f32 %v2363_v45  ;;  %v2361_v63 = vmul.f32 1.442695, %v2329_v54 }
 0x462   : > { %5035 = vpow2.f32 %v2361_v63 }
 0x46c   : > { %v2250_v48 = vpop.xlane.xlu1 %2249 }
 0x46d   : > { %v6161_v21 = vpop.eup %5033  ;;  %v2334_v4 = vsub.f32 %v5998_v53, %v2250_v48  ;;  %v2323_v53 = vsel %vm2232_vm2, %v6169_v29, -inf }
 0x46e   : > { %v2247_v10 = vpop.xlane.xlu0 %2246  ;;  %v2428_v14 = vsel %vm2232_vm2, %v6161_v21, 0.0 }
 0x46f   : > { %v6166_v5 = vpop.eup %5035  ;;  %v2371_v47 = vmul.f32 1.442695, %v2334_v4  ;;  %v2333_v22 = vsub.f32 %v6000_v39, %v2247_v10  ;;  %2429 = vadd.xlane.f32.xlu1 %v2428_v14  ;;  %v6178_v4 = vadd.f32 %v4788_v17, %v6102_v26 }
 0x470   : > { %v2425_v38 = vsel %vm2232_vm2, %v6166_v5, 0.0 }
 0x471   : > { %5037 = vpow2.f32 %v2371_v47  ;;  %2426 = vadd.xlane.f32.xlu0 %v2425_v38  ;;  %v2369_v63 = vmul.f32 1.442695, %v2333_v22  ;;  %v2326_v20 = vsel %vm2232_vm2, %v6178_v4, -inf }
 0x472   : > { %v2244_v14 = vpop.xlane.xlu0 %2243 }
 0x473   : > { %5039 = vpow2.f32 %v2369_v63  ;;  %v2332_v26 = vsub.f32 %v6004_v56, %v2244_v14 }
 0x475   : > { %2324 = vmax.xlane.f32.xlu0 %v2323_v53  ;;  %v2367_v54 = vmul.f32 1.442695, %v2332_v26 }
 0x476   : > { %v2241_v17 = vpop.xlane.xlu0 %2240 }
 0x477   : > { %v2331_v48 = vsub.f32 %v6008_v59, %v2241_v17  ;;  %5041 = vpow2.f32 %v2367_v54 }
 0x479   : > { %v2365_v47 = vmul.f32 1.442695, %v2331_v48 }
 0x47a   : > { %v2256_v34 = vpop.xlane.xlu0 %2255 }
 0x47b   : > { %v2336_v22 = vsub.f32 %v6012_v61, %v2256_v34  ;;  %5043 = vpow2.f32 %v2365_v47 }
 0x47d   : > { %v2375_v63 = vmul.f32 1.442695, %v2336_v22 }
 0x47e   : > { %v6175_v45 = vpop.eup %5037  ;;  %v2253_v38 = vpop.xlane.xlu0 %2252 }
 0x47f   : > { %v2440_v39 = vsel %vm2232_vm2, %v6175_v45, 0.0  ;;  %v2335_v53 = vsub.f32 %v6016_v0, %v2253_v38  ;;  %5045 = vpow2.f32 %v2375_v63 }
 0x480   : > { %2441 = vadd.xlane.f32.xlu1 %v2440_v39  ;;  %v6184_v49 = vpop.eup %5039 }
 0x481   : > { %v2437_v10 = vsel %vm2232_vm2, %v6184_v49, 0.0  ;;  %v2373_v39 = vmul.f32 1.442695, %v2335_v53 }
 0x483   : > { %5047 = vpow2.f32 %v2373_v39 }
 0x484   : > { %2327 = vmax.xlane.f32.xlu1 %v2326_v20  ;;  %v6197_v59 = vpop.eup %5041 }
 0x488   : > { %2438 = vadd.xlane.f32.xlu1 %v2437_v10  ;;  %v6202_v14 = vpop.eup %5043 }
 0x489   : > { %v2431_v17 = vsel %vm2232_vm2, %v6202_v14, 0.0 }
 0x48b   : > { %3805 = vrot.lane.b32.xlu0 %v5791_v36, %s5351_s14 }
 0x48c   : > { %v6206_v26 = vpop.eup %5045 }
 0x490   : > { %v6211_v48 = vpop.eup %5047 }
 0x499   : > { %3803 = vrot.lane.b32.xlu1 %v5801_v40, %s5351_s14  ;;  %v2434_v40 = vsel %vm2232_vm2, %v6197_v59, 0.0 }
 0x4a0   : > { %v2262_v36 = vpop.xlane.xlu1 %2261 }
 0x4a1   : > { %v2338_v56 = vsub.f32 %v6022_v6, %v2262_v36 }
 0x4a3   : > { %v2379_v10 = vmul.f32 1.442695, %v2338_v56 }
 0x4a4   : > { %v2259_v20 = vpop.xlane.xlu1 %2258 }
 0x4a5   : > { %v2337_v61 = vsub.f32 %v6026_v9, %v2259_v20  ;;  %5049 = vpow2.f32 %v2379_v10  ;;  %v2446_v9 = vsel %vm2232_vm2, %v6206_v26, 0.0 }
 0x4a7   : > { %v2377_v0 = vmul.f32 1.442695, %v2337_v61 }
 0x4a9   : > { %5051 = vpow2.f32 %v2377_v0 }
 0x4aa   : > { %2435 = vadd.xlane.f32.xlu0 %v2434_v40 }
 0x4ae   : > { %2432 = vadd.xlane.f32.xlu0 %v2431_v17  ;;  %v2268_v6 = vpop.xlane.xlu0 %2267 }
 0x4af   : > { %v2340_v34 = vsub.f32 %v6036_v15, %v2268_v6  ;;  %v2443_v15 = vsel %vm2232_vm2, %v6211_v48, 0.0 }
 0x4b1   : > { %v2383_v54 = vmul.f32 1.442695, %v2340_v34 }
 0x4b2   : > { %v2274_v47 = vpop.xlane.xlu1 %2273  ;;  %2447 = vadd.xlane.f32.xlu0 %v2446_v9  ;;  %v2265_v22 = vpop.xlane.xlu0 %2264 }
 0x4b3   : > { %5053 = vpow2.f32 %v2383_v54  ;;  %v2342_v38 = vsub.f32 %v6044_v23, %v2274_v47  ;;  %v2339_v63 = vsub.f32 %v6040_v18, %v2265_v22  ;;  %v6219_v61 = vpop.eup %5049 }
 0x4b4   : > { %v2452_v34 = vsel %vm2232_vm2, %v6219_v61, 0.0 }
 0x4b5   : > { %v2387_v53 = vmul.f32 1.442695, %v2342_v38  ;;  %v2381_v36 = vmul.f32 1.442695, %v2339_v63 }
 0x4b6   : > { %v2271_v39 = vpop.xlane.xlu1 %2270  ;;  %2444 = vadd.xlane.f32.xlu0 %v2443_v15 }
 0x4b7   : > { %5055 = vpow2.f32 %v2387_v53  ;;  %v2341_v56 = vsub.f32 %v6048_v30, %v2271_v39  ;;  %v2280_v20 = vpop.xlane.xlu0 %2279  ;;  %v6225_v30 = vpop.eup %5051 }
 0x4b8   : > { %5057 = vpow2.f32 %v2381_v36  ;;  %v2344_v10 = vsub.f32 %v6056_v27, %v2280_v20 }
 0x4b9   : > { %v2385_v40 = vmul.f32 1.442695, %v2341_v56 }
 0x4ba   : > { %v2391_v23 = vmul.f32 1.442695, %v2344_v10 }
 0x4bb   : > { %5059 = vpow2.f32 %v2385_v40  ;;  %v2286_v18 = vpop.xlane.xlu1 %2285  ;;  %v2277_v0 = vpop.xlane.xlu0 %2276 }
 0x4bc   : > { %5061 = vpow2.f32 %v2391_v23  ;;  %v2346_v17 = vsub.f32 %v6068_v51, %v2286_v18  ;;  %v2343_v6 = vsub.f32 %v6062_v44, %v2277_v0  ;;  %v2449_v44 = vsel %vm2232_vm2, %v6225_v30, 0.0 }
 0x4bd   : > { %2453 = vadd.xlane.f32.xlu1 %v2452_v34 }
 0x4be   : > { %v2395_v54 = vmul.f32 1.442695, %v2346_v17  ;;  %v2389_v27 = vmul.f32 1.442695, %v2343_v6 }
 0x4bf   : > { %v2283_v9 = vpop.xlane.xlu1 %2282  ;;  %v2292_v47 = vpop.xlane.xlu0 %2291 }
 0x4c0   : > { %v6227_v22 = vpop.eup %5053  ;;  %5063 = vpow2.f32 %v2395_v54  ;;  %v2345_v38 = vsub.f32 %v6070_v52, %v2283_v9  ;;  %v2348_v63 = vsub.f32 %v6078_v58, %v2292_v47 }
 0x4c1   : > { %5065 = vpow2.f32 %v2389_v27  ;;  %2450 = vadd.xlane.f32.xlu1 %v2449_v44  ;;  %v2458_v51 = vsel %vm2232_vm2, %v6227_v22, 0.0 }
 0x4c2   : > { %v2393_v53 = vmul.f32 1.442695, %v2345_v38  ;;  %v2399_v36 = vmul.f32 1.442695, %v2348_v63  ;;  %2459 = vadd.xlane.f32.xlu0 %v2458_v51 }
 0x4c3   : > { %v2298_v15 = vpop.xlane.xlu1 %2297  ;;  %v2289_v39 = vpop.xlane.xlu0 %2288 }
 0x4c4   : > { %v6235_v56 = vpop.eup %5055  ;;  %5067 = vpow2.f32 %v2393_v53  ;;  %v2350_v52 = vsub.f32 %v6088_v3, %v2298_v15  ;;  %v2347_v58 = vsub.f32 %v6082_v62, %v2289_v39 }
 0x4c5   : > { %v6239_v20 = vpop.eup %5057  ;;  %5069 = vpow2.f32 %v2399_v36  ;;  %v2464_v10 = vsel %vm2232_vm2, %v6235_v56, 0.0 }
 0x4c6   : > { %v2403_v40 = vmul.f32 1.442695, %v2350_v52  ;;  %v2397_v23 = vmul.f32 1.442695, %v2347_v58  ;;  %2465 = vadd.xlane.f32.xlu1 %v2464_v10  ;;  %v2455_v18 = vsel %vm2232_vm2, %v6239_v20, 0.0 }
 0x4c7   : > { %v2295_v0 = vpop.xlane.xlu1 %2294  ;;  %2456 = vadd.xlane.f32.xlu0 %v2455_v18  ;;  %v2304_v17 = vpop.xlane.xlu0 %2303 }
 0x4c8   : > { %v6245_v6 = vpop.eup %5059  ;;  %5071 = vpow2.f32 %v2403_v40  ;;  %v2349_v62 = vsub.f32 %v6092_v8, %v2295_v0  ;;  %v2352_v3 = vsub.f32 %v6100_v19, %v2304_v17 }
 0x4c9   : > { %v6249_v34 = vpop.eup %5061  ;;  %5073 = vpow2.f32 %v2397_v23  ;;  %v2461_v54 = vsel %vm2232_vm2, %v6245_v6, 0.0 }
 0x4ca   : > { %v2401_v27 = vmul.f32 1.442695, %v2349_v62  ;;  %v2407_v9 = vmul.f32 1.442695, %v2352_v3  ;;  %2462 = vadd.xlane.f32.xlu1 %v2461_v54  ;;  %v2470_v47 = vsel %vm2232_vm2, %v6249_v34, 0.0 }
 0x4cb   : > { %v2310_v38 = vpop.xlane.xlu1 %2309  ;;  %2471 = vadd.xlane.f32.xlu0 %v2470_v47  ;;  %v2301_v63 = vpop.xlane.xlu0 %2300 }
 0x4cc   : > { %5075 = vpow2.f32 %v2401_v27  ;;  %v2354_v8 = vsub.f32 %v6113_v41, %v2310_v38  ;;  %v2351_v19 = vsub.f32 %v6104_v25, %v2301_v63 }
 0x4cd   : > { %v6257_v44 = vpop.eup %5063  ;;  %5077 = vpow2.f32 %v2407_v9 }
 0x4ce   : > { %v6259_v51 = vpop.eup %5065  ;;  %v2411_v53 = vmul.f32 1.442695, %v2354_v8  ;;  %v2405_v36 = vmul.f32 1.442695, %v2351_v19  ;;  %v2476_v15 = vsel %vm2232_vm2, %v6257_v44, 0.0 }
 0x4cf   : > { %v2307_v39 = vpop.xlane.xlu1 %2306  ;;  %2477 = vadd.xlane.f32.xlu1 %v2476_v15  ;;  %v2467_v52 = vsel %vm2232_vm2, %v6259_v51, 0.0 }
 0x4d0   : > { %5079 = vpow2.f32 %v2411_v53  ;;  %v2353_v41 = vsub.f32 %v6117_v46, %v2307_v39  ;;  %2468 = vadd.xlane.f32.xlu0 %v2467_v52 }
 0x4d1   : > { %v6266_v25 = vpop.eup %5067  ;;  %5081 = vpow2.f32 %v2405_v36  ;;  %v2313_v58 = vpop.xlane.xlu0 %2312 }
 0x4d2   : > { %v6268_v10 = vpop.eup %5069  ;;  %v2409_v40 = vmul.f32 1.442695, %v2353_v41  ;;  %v2355_v23 = vsub.f32 %v6128_v2, %v2313_v58  ;;  %v2473_v18 = vsel %vm2232_vm2, %v6266_v25, 0.0 }
 0x4d3   : > { %v2316_v0 = vpop.xlane.xlu1 %2315  ;;  %2474 = vadd.xlane.f32.xlu1 %v2473_v18  ;;  %v2482_v17 = vsel %vm2232_vm2, %v6268_v10, 0.0 }
 0x4d4   : > { %5083 = vpow2.f32 %v2409_v40  ;;  %v2413_v46 = vmul.f32 1.442695, %v2355_v23  ;;  %v2356_v62 = vsub.f32 %v6126_v1, %v2316_v0  ;;  %2483 = vadd.xlane.f32.xlu0 %v2482_v17 }
 0x4d5   : > { %v6276_v3 = vpop.eup %5071  ;;  %v2319_v54 = vpop.xlane.xlu0 %2318 }
 0x4d6   : > { %v6278_v27 = vpop.eup %5073  ;;  %5085 = vpow2.f32 %v2413_v46  ;;  %v2415_v2 = vmul.f32 1.442695, %v2356_v62  ;;  %v2357_v9 = vsub.f32 %v6139_v33, %v2319_v54  ;;  %v2488_v47 = vsel %vm2232_vm2, %v6276_v3, 0.0 }
 0x4d7   : > { %v2322_v38 = vpop.xlane.xlu1 %2321  ;;  %2489 = vadd.xlane.f32.xlu1 %v2488_v47  ;;  %v2479_v63 = vsel %vm2232_vm2, %v6278_v27, 0.0 }
 0x4d8   : > { %5087 = vpow2.f32 %v2415_v2  ;;  %v2417_v1 = vmul.f32 1.442695, %v2357_v9  ;;  %v2358_v8 = vsub.f32 %v6137_v31, %v2322_v38  ;;  %2480 = vadd.xlane.f32.xlu0 %v2479_v63 }
 0x4d9   : > { %v6286_v19 = vpop.eup %5075 }
 0x4da   : > { %v6288_v53 = vpop.eup %5077  ;;  %5089 = vpow2.f32 %v2417_v1  ;;  %v2419_v36 = vmul.f32 1.442695, %v2358_v8  ;;  %v2485_v33 = vsel %vm2232_vm2, %v6286_v19, 0.0 }
 0x4db   : > { %2486 = vadd.xlane.f32.xlu1 %v2485_v33  ;;  %v2494_v15 = vsel %vm2232_vm2, %v6288_v53, 0.0 }
 0x4dc   : > { %5091 = vpow2.f32 %v2419_v36  ;;  %2495 = vadd.xlane.f32.xlu0 %v2494_v15 }
 0x4dd   : > { %v6294_v39 = vpop.eup %5079 }
 0x4de   : > { %v6296_v52 = vpop.eup %5081  ;;  %v2500_v31 = vsel %vm2232_vm2, %v6294_v39, 0.0 }
 0x4df   : > { %2501 = vadd.xlane.f32.xlu1 %v2500_v31  ;;  %v2491_v41 = vsel %vm2232_vm2, %v6296_v52, 0.0 }
 0x4e0   : > { %2492 = vadd.xlane.f32.xlu0 %v2491_v41 }
 0x4e1   : > { %v6302_v58 = vpop.eup %5083 }
 0x4e2   : > { %v2497_v40 = vsel %vm2232_vm2, %v6302_v58, 0.0 }
 0x4e3   : > { %v6306_v23 = vpop.eup %5085  ;;  %2498 = vadd.xlane.f32.xlu1 %v2497_v40 }
 0x4e4   : > { %v2503_v17 = vsel %vm2232_vm2, %v6306_v23, 0.0 }
 0x4e5   : > { %v6308_v18 = vpop.eup %5087 }
 0x4e6   : > { %v2506_v0 = vsel %vm2232_vm2, %v6308_v18, 0.0 }
 0x4e7   : > { %v6314_v46 = vpop.eup %5089  ;;  %2507 = vadd.xlane.f32.xlu0 %v2506_v0  ;;  %2504 = vadd.xlane.f32.xlu1 %v2503_v17 }
 0x4e8   : > { %v2509_v2 = vsel %vm2232_vm2, %v6314_v46, 0.0 }
 0x4e9   : > { %v6316_v62 = vpop.eup %5091 }
 0x4ea   : > { %v2512_v54 = vsel %vm2232_vm2, %v6316_v62, 0.0 }
 0x4eb   : > { %2513 = vadd.xlane.f32.xlu1 %v2512_v54  ;;  %2510 = vadd.xlane.f32.xlu0 %v2509_v2 }
 0x4f8   : > { %v2430_v9 = vpop.xlane.xlu1 %2429 }
 0x4f9   : > { %5093 = vrcp.f32 %v2430_v9 }
 0x4fa   : > { %v2427_v47 = vpop.xlane.xlu0 %2426 }
 0x4fb   : > { %5095 = vrcp.f32 %v2427_v47 }
 0x4fe   : > { %v2325_v38 = vpop.xlane.xlu0 %2324 }
 0x4ff   : > { %v2359_v63 = vsub.f32 %v6169_v29, %v2325_v38 }
 0x501   : > { %v2421_v1 = vmul.f32 1.442695, %v2359_v63 }
 0x502   : > { %v6350_v9 = vpop.permute.xlu0 %3805 }
 0x503   : > { %5097 = vpow2.f32 %v2421_v1 }
 0x506   : > { %v5094_v8 = vpop.eup %5093 }
 0x507   : > { %v2554_v31 = vmul.f32 %v5094_v8, %v6161_v21 }
 0x508   : > { %v5096_v36 = vpop.eup %5095 }
 0x509   : > { %v2442_v33 = vpop.xlane.xlu1 %2441  ;;  %v2553_v15 = vmul.f32 %v5096_v36, %v6166_v5 }
 0x50a   : > { %5099 = vrcp.f32 %v2442_v33 }
 0x50b   : > { %4793 = vmatprep.mubr.msk.f32.mxu0 %vm2232_vm2, %v2553_v15 }
 0x50c   : > { %4794 = vmatmul.mubr.msk.f32.vlgmr.msra.gmra.mxu0 %vm2232_vm2, %v2554_v31 }
 0x50d   : > { %v2328_v41 = vpop.xlane.xlu1 %2327  ;;  %4804 = vmatpush3.msra.mxu0 %v5984_v43 }
 0x50e   : > { %v2360_v40 = vsub.f32 %v6178_v4, %v2328_v41  ;;  %4805 = vmatprep.subr.mxu0 %v6024_v7 }
 0x50f   : > { %4806 = vmatpush3.msra.mxu0 %v6024_v7 }
 0x510   : > { %v6331_v29 = vpop.eup %5097  ;;  %v2423_v0 = vmul.f32 1.442695, %v2360_v40  ;;  %4817 = vmatprep.subr.mxu0 %v6032_v12 }
 0x511   : > { %v2439_v5 = vpop.xlane.xlu1 %2438  ;;  %v2515_v21 = vsel %vm2232_vm2, %v6331_v29, 0.0 }
 0x512   : > { %5101 = vpow2.f32 %v2423_v0  ;;  %2516 = vadd.xlane.f32.xlu0 %v2515_v21 }
 0x513   : > { %5103 = vrcp.f32 %v2439_v5 }
 0x515   : > { %v6354_v38 = vpop.permute.xlu1 %3803 }
 0x517   : > { %v5100_v43 = vpop.eup %5099 }
 0x518   : > { %v2558_v2 = vmul.f32 %v5100_v43, %v6175_v45 }
 0x51f   : > { %v6336_v17 = vpop.eup %5101 }
 0x520   : > { %v5104_v4 = vpop.eup %5103  ;;  %v2518_v7 = vsel %vm2232_vm2, %v6336_v17, 0.0 }
 0x521   : > { %2519 = vadd.xlane.f32.xlu1 %v2518_v7  ;;  %v2557_v54 = vmul.f32 %v5104_v4, %v6184_v49 }
 0x523   : > { %4807 = vmatprep.mubr.msk.f32.mxu0 %vm2232_vm2, %v2557_v54 }
 0x524   : > { %4808 = vmatmul.mubr.msk.f32.vlgmr.msra.gmra.mxu0 %vm2232_vm2, %v2558_v2 }
 0x525   : > { %4818 = vmatpush3.msra.mxu0 %v6032_v12 }
 0x526   : > { %4819 = vmatprep.subr.mxu0 %v6034_v13 }
 0x527   : > { %4820 = vmatpush3.msra.mxu0 %v6034_v13 }
 0x528   : > { %4831 = vmatprep.subr.mxu0 %v6046_v24  ;;  %3892 = vrot.lane.b32.xlu0 %v5788_v35, %s5351_s14 }
 0x532   : > { %3890 = vrot.lane.b32.xlu1 %v5798_v37, %s5351_s14  ;;  %s5271_s14 = sshll.u32 %s5355_s23, 4  ;;  %s5272_s14 = int_to_ptr.vmem [resolvable:$false] %s5271_s14 }
 0x533   : > { %v2436_v45 = vpop.xlane.xlu0 %2435  ;;  %p5274_p13 = scmp.lt.s32.totalorder %s6536_s16, %s5272_s14 }
 0x534   : > { %5105 = vrcp.f32 %v2436_v45 }
 0x537   : > { %v2433_v49 = vpop.xlane.xlu0 %2432 }
 0x538   : > { %5107 = vrcp.f32 %v2433_v49 }
 0x53b   : > { %v2448_v47 = vpop.xlane.xlu0 %2447 }
 0x53c   : > { %5109 = vrcp.f32 %v2448_v47 }
 0x53f   : > { %v2445_v12 = vpop.xlane.xlu0 %2444 }
 0x540   : > { %5111 = vrcp.f32 %v2445_v12 }
 0x541   : > { %v5106_v13 = vpop.eup %5105 }
 0x542   : > { %v2556_v8 = vmul.f32 %v5106_v13, %v6197_v59 }
 0x545   : > { %v5108_v63 = vpop.eup %5107 }
 0x546   : > { %v2454_v1 = vpop.xlane.xlu1 %2453  ;;  %v2555_v35 = vmul.f32 %v5108_v63, %v6202_v14 }
 0x547   : > { %5113 = vrcp.f32 %v2454_v1 }
 0x548   : > { %4800 = vmatprep.mubr.msk.f32.mxu1 %vm2232_vm2, %v2555_v35 }
 0x549   : > { %4801 = vmatmul.mubr.msk.f32.vlgmr.msra.gmra.mxu1 %vm2232_vm2, %v2556_v8  ;;  %v5110_v33 = vpop.eup %5109  ;;  %v6636_v8 = vld [vmem:[#allocation22_spill] sm:$0xff] }
 0x54a   : > { %v2451_v37 = vpop.xlane.xlu1 %2450  ;;  %4811 = vmatpush3.msra.mxu1 %v5987_v28  ;;  %v2560_v31 = vmul.f32 %v5110_v33, %v6206_v26 }
 0x54b   : > { %5115 = vrcp.f32 %v2451_v37  ;;  %4812 = vmatprep.subr.mxu1 %v6038_v16  ;;  %v2460_v36 = vpop.xlane.xlu0 %2459 }
 0x54c   : > { %4813 = vmatpush3.msra.mxu1 %v6038_v16  ;;  %5117 = vrcp.f32 %v2460_v36  ;;  %v6637_v36 = vld [vmem:[#allocation16_spill] sm:$0xff] }
 0x54d   : > { %v5112_v15 = vpop.eup %5111  ;;  %4824 = vmatprep.subr.mxu1 %v6054_v32 }
 0x54e   : > { %v2559_v59 = vmul.f32 %v5112_v15, %v6211_v48 }
 0x54f   : > { %v2466_v14 = vpop.xlane.xlu1 %2465 }
 0x550   : > { %v2457_v41 = vpop.xlane.xlu0 %2456  ;;  %4814 = vmatprep.mubr.msk.f32.mxu1 %vm2232_vm2, %v2559_v59 }
 0x551   : > { %5119 = vrcp.f32 %v2457_v41  ;;  %4815 = vmatmul.mubr.msk.f32.vlgmr.msra.gmra.mxu1 %vm2232_vm2, %v2560_v31  ;;  %v6639_v31 = vld [vmem:[#allocation20_spill] sm:$0xff] }
 0x552   : > { %4825 = vmatpush3.msra.mxu1 %v6054_v32  ;;  %5121 = vrcp.f32 %v2466_v14 }
 0x553   : > { %4826 = vmatprep.subr.mxu1 %v6132_v11  ;;  %v2463_v28 = vpop.xlane.xlu1 %2462 }
 0x554   : > { %5123 = vrcp.f32 %v2463_v28  ;;  %4827 = vmatpush3.msra.mxu1 %v6132_v11  ;;  %v2472_v16 = vpop.xlane.xlu0 %2471  ;;  %v5114_v26 = vpop.eup %5113 }
 0x555   : > { %4838 = vmatprep.subr.mxu1 %v6066_v50  ;;  %5125 = vrcp.f32 %v2472_v16  ;;  %v2562_v32 = vmul.f32 %v5114_v26, %v6219_v61  ;;  %v6640_v26 = vld [vmem:[#allocation24_spill] sm:$0xff] }
 0x558   : > { %v5116_v48 = vpop.eup %5115  ;;  %v2478_v40 = vpop.xlane.xlu1 %2477 }
 0x559   : > { %v2469_v0 = vpop.xlane.xlu0 %2468  ;;  %v2561_v5 = vmul.f32 %v5116_v48, %v6225_v30  ;;  %v5118_v11 = vpop.eup %5117 }
 0x55a   : > { %5127 = vrcp.f32 %v2469_v0  ;;  %v2564_v54 = vmul.f32 %v5118_v11, %v6227_v22 }
 0x55b   : > { %4821 = vmatprep.mubr.msk.f32.mxu0 %vm2232_vm2, %v2561_v5  ;;  %5129 = vrcp.f32 %v2478_v40  ;;  %v6641_v40 = vld [vmem:[#allocation18_spill] sm:$0xff] }
 0x55c   : > { %v2475_v21 = vpop.xlane.xlu1 %2474  ;;  %4822 = vmatmul.mubr.msk.f32.vlgmr.msra.gmra.mxu0 %vm2232_vm2, %v2562_v32 }
 0x55d   : > { %5131 = vrcp.f32 %v2475_v21  ;;  %4832 = vmatpush3.msra.mxu0 %v6046_v24  ;;  %v2484_v43 = vpop.xlane.xlu0 %2483 }
 0x55e   : > { %v5120_v4 = vpop.eup %5119  ;;  %4833 = vmatprep.subr.mxu0 %v6060_v42  ;;  %5133 = vrcp.f32 %v2484_v43  ;;  %v6643_v43 = vld [vmem:[#allocation23_spill] sm:$0xff] }
 0x55f   : > { %4834 = vmatpush3.msra.mxu0 %v6060_v42  ;;  %v2563_v30 = vmul.f32 %v5120_v4, %v6239_v20  ;;  %v5122_v7 = vpop.eup %5121 }
 0x560   : > { %4845 = vmatprep.subr.mxu0 %v6076_v57  ;;  %v2490_v61 = vpop.xlane.xlu1 %2489  ;;  %v2566_v42 = vmul.f32 %v5122_v7, %v6235_v56 }
 0x561   : > { %v5124_v2 = vpop.eup %5123  ;;  %v2481_v45 = vpop.xlane.xlu0 %2480  ;;  %4828 = vmatprep.mubr.msk.f32.mxu1 %vm2232_vm2, %v2563_v30 }
 0x562   : > { %5135 = vrcp.f32 %v2481_v45  ;;  %4829 = vmatmul.mubr.msk.f32.vlgmr.msra.gmra.mxu1 %vm2232_vm2, %v2564_v54  ;;  %v2565_v24 = vmul.f32 %v5124_v2, %v6245_v6  ;;  %v5126_v49 = vpop.eup %5125  ;;  %v6634_v6 = vld [vmem:[#allocation15_spill] sm:$0xff] }
 0x563   : > { %4839 = vmatpush3.msra.mxu1 %v6066_v50  ;;  %5137 = vrcp.f32 %v2490_v61  ;;  %v2568_v63 = vmul.f32 %v5126_v49, %v6249_v34 }
 0x564   : > { %4840 = vmatprep.subr.mxu1 %v6147_v55  ;;  %v2487_v20 = vpop.xlane.xlu1 %2486  ;;  %4835 = vmatprep.mubr.msk.f32.mxu0 %vm2232_vm2, %v2565_v24 }
 0x565   : > { %5139 = vrcp.f32 %v2487_v20  ;;  %4841 = vmatpush3.msra.mxu1 %v6147_v55  ;;  %v2496_v22 = vpop.xlane.xlu0 %2495  ;;  %4836 = vmatmul.mubr.msk.f32.vlgmr.msra.gmra.mxu0 %vm2232_vm2, %v2566_v42  ;;  %v6635_v55 = vld [vmem:[#allocation17_spill] sm:$0xff] }
 0x566   : > { %4852 = vmatprep.subr.mxu1 %v6080_v60  ;;  %4846 = vmatpush3.msra.mxu0 %v6076_v57  ;;  %5141 = vrcp.f32 %v2496_v22 }
 0x567   : > { %v5128_v50 = vpop.eup %5127  ;;  %4847 = vmatprep.subr.mxu0 %v6634_v6 }
 0x568   : > { %v2502_v56 = vpop.xlane.xlu1 %2501  ;;  %4848 = vmatpush3.msra.mxu0 %v6634_v6  ;;  %v2567_v47 = vmul.f32 %v5128_v50, %v6259_v51  ;;  %v5130_v12 = vpop.eup %5129 }
 0x569   : > { %v2493_v13 = vpop.xlane.xlu0 %2492  ;;  %4859 = vmatprep.subr.mxu0 %v6635_v55  ;;  %v2570_v51 = vmul.f32 %v5130_v12, %v6257_v44 }
 0x56a   : > { %v5132_v1 = vpop.eup %5131  ;;  %5143 = vrcp.f32 %v2493_v13  ;;  %4842 = vmatprep.mubr.msk.f32.mxu1 %vm2232_vm2, %v2567_v47 }
 0x56b   : > { %4843 = vmatmul.mubr.msk.f32.vlgmr.msra.gmra.mxu1 %vm2232_vm2, %v2568_v63  ;;  %v2569_v57 = vmul.f32 %v5132_v1, %v6266_v25  ;;  %5145 = vrcp.f32 %v2502_v56  ;;  %v5134_v34 = vpop.eup %5133  ;;  %v6638_v25 = vld [vmem:[#allocation19_spill] sm:$0xff] }
 0x56c   : > { %4853 = vmatpush3.msra.mxu1 %v6080_v60  ;;  %v2499_v35 = vpop.xlane.xlu1 %2498  ;;  %v2572_v59 = vmul.f32 %v5134_v34, %v6268_v10  ;;  %v4099_v34 = vld [vmem:[#allocation7 + $0x8] sm:$0xff] }
 0x56d   : > { %4854 = vmatprep.subr.mxu1 %v6636_v8  ;;  %5147 = vrcp.f32 %v2499_v35  ;;  %4849 = vmatprep.mubr.msk.f32.mxu0 %vm2232_vm2, %v2569_v57  ;;  %v4101_v57 = vld [vmem:[#allocation7 + $0x18] sm:$0xff] }
 0x56e   : > { %4855 = vmatpush3.msra.mxu1 %v6636_v8  ;;  %4850 = vmatmul.mubr.msk.f32.vlgmr.msra.gmra.mxu0 %vm2232_vm2, %v2570_v51  ;;  %v4100_v51 = vld [vmem:[#allocation7 + $0x10] sm:$0xff] }
 0x56f   : > { %v5136_v37 = vpop.eup %5135  ;;  %4866 = vmatprep.subr.mxu1 %v6637_v36  ;;  %4860 = vmatpush3.msra.mxu0 %v6635_v55 }
 0x570   : > { %4861 = vmatprep.subr.mxu0 %v6638_v25  ;;  %v2505_v60 = vpop.xlane.xlu1 %2504  ;;  %v2508_v33 = vpop.xlane.xlu0 %2507  ;;  %v2571_v44 = vmul.f32 %v5136_v37, %v6278_v27 }
 0x571   : > { %v5138_v15 = vpop.eup %5137  ;;  %5149 = vrcp.f32 %v2505_v60  ;;  %4862 = vmatpush3.msra.mxu0 %v6638_v25 }
 0x572   : > { %v5140_v14 = vpop.eup %5139  ;;  %5151 = vrcp.f32 %v2508_v33  ;;  %4856 = vmatprep.mubr.msk.f32.mxu1 %vm2232_vm2, %v2571_v44  ;;  %4873 = vmatprep.subr.mxu0 %v6639_v31  ;;  %v2574_v16 = vmul.f32 %v5138_v15, %v6276_v3 }
 0x573   : > { %4857 = vmatmul.mubr.msk.f32.vlgmr.msra.gmra.mxu1 %vm2232_vm2, %v2572_v59  ;;  %v2573_v41 = vmul.f32 %v5140_v14, %v6286_v19  ;;  %v5142_v10 = vpop.eup %5141  ;;  %v6642_v19 = vld [vmem:[#allocation21_spill] sm:$0xff] }
 0x574   : > { %4867 = vmatpush3.msra.mxu1 %v6637_v36  ;;  %v2514_v28 = vpop.xlane.xlu1 %2513  ;;  %v2511_v27 = vpop.xlane.xlu0 %2510  ;;  %v2576_v5 = vmul.f32 %v5142_v10, %v6288_v53  ;;  %v4098_v36 = vld [vmem:[#allocation7] sm:$0xff] }
 0x575   : > { %4868 = vmatprep.subr.mxu1 %v6640_v26  ;;  %5153 = vrcp.f32 %v2514_v28  ;;  %4863 = vmatprep.mubr.msk.f32.mxu0 %vm2232_vm2, %v2573_v41 }
 0x576   : > { %4869 = vmatpush3.msra.mxu1 %v6640_v26  ;;  %5155 = vrcp.f32 %v2511_v27  ;;  %4864 = vmatmul.mubr.msk.f32.vlgmr.msra.gmra.mxu0 %vm2232_vm2, %v2574_v16 }
 0x577   : > { %v5144_v48 = vpop.eup %5143  ;;  %4880 = vmatprep.subr.mxu1 %v6641_v40  ;;  %4874 = vmatpush3.msra.mxu0 %v6639_v31 }
 0x578   : > { %4875 = vmatprep.subr.mxu0 %v6642_v19  ;;  %v2575_v3 = vmul.f32 %v5144_v48, %v6296_v52  ;;  %v5146_v0 = vpop.eup %5145 }
 0x579   : > { %4876 = vmatpush3.msra.mxu0 %v6642_v19  ;;  %v2578_v11 = vmul.f32 %v5146_v0, %v6294_v39 }
 0x57a   : > { %v5148_v32 = vpop.eup %5147  ;;  %4870 = vmatprep.mubr.msk.f32.mxu1 %vm2232_vm2, %v2575_v3  ;;  %4887 = vmatprep.subr.mxu0 %v6350_v9 }
 0x57b   : > { %4871 = vmatmul.mubr.msk.f32.vlgmr.msra.gmra.mxu1 %vm2232_vm2, %v2576_v5  ;;  %v2577_v21 = vmul.f32 %v5148_v32, %v6302_v58 }
 0x57c   : > { %4881 = vmatpush3.msra.mxu1 %v6641_v40 }
 0x57d   : > { %4882 = vmatprep.subr.mxu1 %v6643_v43  ;;  %4877 = vmatprep.mubr.msk.f32.mxu0 %vm2232_vm2, %v2577_v21 }
 0x57e   : > { %v5150_v52 = vpop.eup %5149  ;;  %4883 = vmatpush3.msra.mxu1 %v6643_v43  ;;  %4878 = vmatmul.mubr.msk.f32.vlgmr.msra.gmra.mxu0 %vm2232_vm2, %v2578_v11 }
 0x57f   : > { %v5152_v53 = vpop.eup %5151  ;;  %4888 = vmatpush3.msra.mxu0 %v6350_v9  ;;  %v2579_v4 = vmul.f32 %v5150_v52, %v6306_v23 }
 0x580   : > { %4889 = vmatprep.subr.mxu0 %v6354_v38  ;;  %v2580_v58 = vmul.f32 %v5152_v53, %v6308_v18 }
 0x581   : > { %4890 = vmatpush3.msra.mxu0 %v6354_v38  ;;  %4884 = vmatprep.mubr.msk.f32.mxu1 %vm2232_vm2, %v2579_v4 }
 0x582   : > { %v5154_v39 = vpop.eup %5153  ;;  %4885 = vmatmul.mubr.msk.f32.vlgmr.msra.gmra.mxu1 %vm2232_vm2, %v2580_v58  ;;  %4901 = vmatprep.subr.mxu0 %v4101_v57 }
 0x583   : > { %v5156_v30 = vpop.eup %5155  ;;  %v2582_v7 = vmul.f32 %v5154_v39, %v6316_v62 }
 0x584   : > { %v2581_v61 = vmul.f32 %v5156_v30, %v6314_v46 }
 0x586   : > { %4891 = vmatprep.mubr.msk.f32.mxu0 %vm2232_vm2, %v2581_v61 }
 0x587   : > { %4892 = vmatmul.mubr.msk.f32.vlgmr.msra.gmra.mxu0 %vm2232_vm2, %v2582_v7 }
 0x588   : > { %4902 = vmatpush3.msra.mxu0 %v4101_v57 }
 0x589   : > { %4903 = vmatprep.subr.mxu0 %v4100_v51 }
 0x58a   : > { %4904 = vmatpush3.msra.mxu0 %v4100_v51 }
 0x58b   : > { %4905 = vmatprep.subr.mxu0 %v4099_v34 }
 0x58c   : > { %4906 = vmatpush3.msra.mxu0 %v4099_v34 }
 0x58d   : > { %4907 = vmatprep.subr.mxu0 %v4098_v36 }
 0x58e   : > { %4908 = vmatpush3.msra.mxu0 %v4098_v36 }
 0x59b   : > { %v2517_v23 = vpop.xlane.xlu0 %2516 }
 0x59c   : > { %5157 = vrcp.f32 %v2517_v23 }
 0x59f   : > { %v3893_v9 = vpop.permute.xlu0 %3892 }
 0x5a0   : > { %4894 = vmatprep.subr.mxu1 %v3893_v9 }
 0x5a1   : > { %4895 = vmatpush3.msra.mxu1 %v3893_v9 }
 0x5a9   : > { %v5158_v18 = vpop.eup %5157 }
 0x5aa   : > { %v2520_v38 = vpop.xlane.xlu1 %2519  ;;  %v2583_v54 = vmul.f32 %v5158_v18, %v6331_v29 }
 0x5ab   : > { %5159 = vrcp.f32 %v2520_v38 }
 0x5ac   : > { %4898 = vmatprep.mubr.msk.f32.mxu1 %vm2232_vm2, %v2583_v54 }
 0x5ae   : > { %v3891_v2 = vpop.permute.xlu1 %3890 }
 0x5af   : > { %4896 = vmatprep.subr.mxu1 %v3891_v2 }
 0x5b0   : > { %4897 = vmatpush3.msra.mxu1 %v3891_v2 }
 0x5b8   : > { %v5160_v46 = vpop.eup %5159 }
 0x5b9   : > { %v2584_v62 = vmul.f32 %v5160_v46, %v6336_v17 }
 0x5bb   : > { %4899 = vmatmul.mubr.msk.f32.vlgmr.msra.gmra.mxu1 %vm2232_vm2, %v2584_v62 }
 0x5cc   : > { %v6454_v45 = vpop.f32.mrf.mxu0 }
 0x5ce   : > { %v6456_v24 = vpop.f32.mrf.mxu0 }
 0x5e4   : > { %v6458_v42 = vpop.f32.mrf.mxu0 }
 0x5e6   : > { %v6462_v29 = vpop.f32.mrf.mxu0 }
 0x609   : > { %v6460_v20 = vpop.f32.mrf.mxu1 }
 0x60b   : > { %v6464_v22 = vpop.f32.mrf.mxu1 }
 0x611   : > { %v6466_v49 = vpop.f32.mrf.mxu1 }
 0x613   : > { %v6470_v6 = vpop.f32.mrf.mxu1 }
 0x61c   : > { %v4823_v50 = vpop.f32.mrf.mxu0 }
 0x61d   : > { %3987 = vrot.lane.b32.xlu1 %v4823_v50, %s5352_s20 }
 0x61e   : > { %v3011_v17 = vpop.f32.mrf.mxu0 }
 0x61f   : > { %3985 = vrot.lane.b32.xlu0 %v3011_v17, %s5352_s20 }
 0x622   : > { %v4830_v56 = vpop.f32.mrf.mxu1 }
 0x623   : > { %3991 = vrot.lane.b32.xlu1 %v4830_v56, %s5352_s20 }
 0x624   : > { %v3098_v47 = vpop.f32.mrf.mxu1 }
 0x625   : > { %3989 = vrot.lane.b32.xlu0 %v3098_v47, %s5352_s20  ;;  %v4837_v12 = vpop.f32.mrf.mxu0 }
 0x627   : > { %3995 = vrot.lane.b32.xlu1 %v4837_v12, %s5352_s20  ;;  %v3185_v13 = vpop.f32.mrf.mxu0 }
 0x629   : > { %3993 = vrot.lane.b32.xlu0 %v3185_v13, %s5352_s20 }
 0x62b   : > { %v4844_v55 = vpop.f32.mrf.mxu1 }
 0x62c   : > { %3999 = vrot.lane.b32.xlu1 %v4844_v55, %s5352_s20 }
 0x62d   : > { %v3272_v63 = vpop.f32.mrf.mxu1 }
 0x62e   : > { %3997 = vrot.lane.b32.xlu0 %v3272_v63, %s5352_s20  ;;  %v4851_v1 = vpop.f32.mrf.mxu0 }
 0x630   : > { %4019 = vrot.lane.b32.xlu1 %v4851_v1, %s5353_s21  ;;  %v3359_v35 = vpop.f32.mrf.mxu0 }
 0x632   : > { %4017 = vrot.lane.b32.xlu0 %v3359_v35, %s5353_s21 }
 0x633   : > { %v4858_v8 = vpop.f32.mrf.mxu1 }
 0x634   : > { %4023 = vrot.lane.b32.xlu1 %v4858_v8, %s5353_s21 }
 0x635   : > { %v3446_v37 = vpop.f32.mrf.mxu1 }
 0x636   : > { %4021 = vrot.lane.b32.xlu0 %v3446_v37, %s5353_s21  ;;  %v4865_v25 = vpop.f32.mrf.mxu0 }
 0x638   : > { %4027 = vrot.lane.b32.xlu1 %v4865_v25, %s5353_s21  ;;  %v3533_v60 = vpop.f32.mrf.mxu0 }
 0x63a   : > { %4025 = vrot.lane.b32.xlu0 %v3533_v60, %s5353_s21 }
 0x63b   : > { %v4872_v33 = vpop.f32.mrf.mxu1 }
 0x63c   : > { %4031 = vrot.lane.b32.xlu1 %v4872_v33, %s5353_s21 }
 0x63d   : > { %v3620_v44 = vpop.f32.mrf.mxu1 }
 0x63e   : > { %4029 = vrot.lane.b32.xlu0 %v3620_v44, %s5353_s21  ;;  %v4879_v15 = vpop.f32.mrf.mxu0  ;;  %s5273_s21 = scalar_lea.vmem %s5272_s14, 2048 }
 0x63f   : > { %p5275_p0 = scmp.lt.s32.totalorder %s5273_s21, %s5267_s10 }
 0x640   : > { %4051 = vrot.lane.b32.xlu1 %v4879_v15, %s5354_s11  ;;  %v3707_v59 = vpop.f32.mrf.mxu0 }
 0x641   : > { %p5276_p2 = por %p5275_p0, %p5274_p13 }
 0x642   : > { %4049 = vrot.lane.b32.xlu0 %v3707_v59, %s5354_s11  ;;  %v4886_v14 = vpop.f32.mrf.mxu1 }
 0x643   : > { %p5277_p10 = pnand %p5276_p2, %p5270_p9 }
 0x644   : > { %4055 = vrot.lane.b32.xlu1 %v4886_v14, %s5354_s11  ;;  %v3794_v31 = vpop.f32.mrf.mxu1 }
 0x646   : > { %4053 = vrot.lane.b32.xlu0 %v3794_v31, %s5354_s11 }
 0x647   : > { %v4893_v41 = vpop.f32.mrf.mxu0 }
 0x648   : > { %4059 = vrot.lane.b32.xlu1 %v4893_v41, %s5354_s11 }
 0x649   : > { %v3881_v28 = vpop.f32.mrf.mxu0 }
 0x64a   : > { %4057 = vrot.lane.b32.xlu0 %v3881_v28, %s5354_s11 }
 0x67b   : > { %v4900_v27 = vpop.f32.mrf.mxu1 }
 0x67c   : > { %4063 = vrot.lane.b32.xlu1 %v4900_v27, %s5354_s11 }
 0x67d   : > { %v3968_v16 = vpop.f32.mrf.mxu1 }
 0x67e   : > { %4061 = vrot.lane.b32.xlu0 %v3968_v16, %s5354_s11 }
 0x68f   : > { %v3988_v26 = vpop.permute.xlu1 %3987 }
 0x690   : > { %v4074_v7 = vsel %vm771_vm1, %v6454_v45, %v3988_v26 }
 0x691   : > { %v3986_v10 = vpop.permute.xlu0 %3985 }
 0x692   : > { %v4073_v30 = vsel %vm771_vm1, %v6456_v24, %v3986_v10 }
 0x695   : > { %v3992_v48 = vpop.permute.xlu1 %3991 }
 0x696   : > { %v4076_v46 = vsel %vm771_vm1, %v6460_v20, %v3992_v48 }
 0x697   : > { %v3990_v40 = vpop.permute.xlu0 %3989 }
 0x698   : > { %v4075_v2 = vsel %vm771_vm1, %v6464_v22, %v3990_v40 }
 0x699   : > { %v3996_v19 = vpop.permute.xlu1 %3995 }
 0x69a   : > { %v4078_v20 = vsel %vm771_vm1, %v6458_v42, %v3996_v19 }
 0x69b   : > { %v3994_v3 = vpop.permute.xlu0 %3993 }
 0x69c   : > { %v4077_v56 = vsel %vm771_vm1, %v6462_v29, %v3994_v3 }
 0x69e   : > { %v4000_v0 = vpop.permute.xlu1 %3999 }
 0x69f   : > { %v4080_v42 = vsel %vm771_vm1, %v6466_v49, %v4000_v0 }
 0x6a0   : > { %v3998_v5 = vpop.permute.xlu0 %3997 }
 0x6a1   : > { %v4079_v29 = vsel %vm771_vm1, %v6470_v6, %v3998_v5  ;;  %v4486_v6 = vld [vmem:[%s6587_s6] ss:$0 sm:$0xff] }
 0x6a2   : > { %v4020_v32 = vpop.permute.xlu1 %4019 }
 0x6a3   : > { %v4082_v9 = vsel %vm2232_vm2, %v4074_v7, %v4020_v32 }
 0x6a4   : > { %v4018_v21 = vpop.permute.xlu0 %4017 }
 0x6a5   : > { %v4081_v61 = vsel %vm2232_vm2, %v4073_v30, %v4018_v21 }
 0x6a6   : > { %v4024_v11 = vpop.permute.xlu1 %4023 }
 0x6a7   : > { %v4084_v24 = vsel %vm2232_vm2, %v4076_v46, %v4024_v11 }
 0x6a8   : > { %v4022_v43 = vpop.permute.xlu0 %4021 }
 0x6a9   : > { %v4083_v62 = vsel %vm2232_vm2, %v4075_v2, %v4022_v43 }
 0x6aa   : > { %v4028_v52 = vpop.permute.xlu1 %4027 }
 0x6ab   : > { %v4086_v13 = vsel %vm2232_vm2, %v4078_v20, %v4028_v52 }
 0x6ac   : > { %v4026_v53 = vpop.permute.xlu0 %4025 }
 0x6ad   : > { %v4085_v47 = vsel %vm2232_vm2, %v4077_v56, %v4026_v53 }
 0x6ae   : > { %v4032_v4 = vpop.permute.xlu1 %4031 }
 0x6af   : > { %v4088_v51 = vsel %vm2232_vm2, %v4080_v42, %v4032_v4 }
 0x6b0   : > { %v4030_v58 = vpop.permute.xlu0 %4029 }
 0x6b1   : > { %v4087_v57 = vsel %vm2232_vm2, %v4079_v29, %v4030_v58 }
 0x6b2   : > { %v4052_v39 = vpop.permute.xlu1 %4051 }
 0x6b3   : > { %v4091_v38 = vsel %vm4089_vm3, %v4082_v9, %v4052_v39 }
 0x6b4   : > { %v4050_v23 = vpop.permute.xlu0 %4049 }
 0x6b5   : > { %v4090_v18 = vsel %vm4089_vm3, %v4081_v61, %v4050_v23 }
 0x6b6   : > { %v4056_v54 = vpop.permute.xlu1 %4055  ;;  %4909 = vmatprep.mubr.msk.f32.mxu0 %vm379_vm0, %v4090_v18 }
 0x6b7   : > { %4910 = vmatmul.mubr.msk.f32.vlgmr.msra.gmra.mxu0 %vm379_vm0, %v4091_v38  ;;  %v4093_v17 = vsel %vm4089_vm3, %v4084_v24, %v4056_v54 }
 0x6b8   : > { %v4054_v45 = vpop.permute.xlu0 %4053 }
 0x6b9   : > { %v4092_v50 = vsel %vm4089_vm3, %v4083_v62, %v4054_v45 }
 0x6ba   : > { %4912 = vmatprep.mubr.msk.f32.mxu0 %vm379_vm0, %v4092_v50  ;;  %v4060_v22 = vpop.permute.xlu1 %4059 }
 0x6bb   : > { %4913 = vmatmul.mubr.msk.f32.gmra.mxu0 %vm379_vm0, %v4093_v17  ;;  %v4095_v63 = vsel %vm4089_vm3, %v4086_v13, %v4060_v22 }
 0x6bc   : > { %v4058_v12 = vpop.permute.xlu0 %4057 }
 0x6bd   : > { %v4094_v55 = vsel %vm4089_vm3, %v4085_v47, %v4058_v12 }
 0x6be   : > { %4915 = vmatprep.mubr.msk.f32.mxu0 %vm379_vm0, %v4094_v55 }
 0x6bf   : > { %4916 = vmatmul.mubr.msk.f32.gmra.mxu0 %vm379_vm0, %v4095_v63 }
 0x6ee   : > { %v4064_v1 = vpop.permute.xlu1 %4063 }
 0x6ef   : > { %v4097_v34 = vsel %vm4089_vm3, %v4088_v51, %v4064_v1 }
 0x6f0   : > { %v4062_v35 = vpop.permute.xlu0 %4061 }
 0x6f1   : > { %v4096_v8 = vsel %vm4089_vm3, %v4087_v57, %v4062_v35 }
 0x6f2   : > { %4918 = vmatprep.mubr.msk.f32.mxu0 %vm379_vm0, %v4096_v8 }
 0x6f3   : > { %4919 = vmatmul.mubr.msk.f32.gmra.mxu0 %vm379_vm0, %v4097_v34 }
 0x777   : > { %v4911_v37 = vpop.f32.mrf.mxu0 }
 0x778   : > { %v4205_v36 = vadd.f32 %v4911_v37, %v4486_v6 }
 0x779   : > { %v4199_v49 = vpop.f32.mrf.mxu0 }
 0x77a   : > { %4239 = vst.msk [vmem:[%s368_s17 + $0x8] sm:$0xff] %vm379_vm0, %v4205_v36  ;;  %v4200_v25 = vadd.f32 %v4486_v6, %v4199_v49 }
 0x77b   : > { %v4914_v60 = vpop.f32.mrf.mxu0 }
 0x77c   : > { %4238 = vst.msk [vmem:[%s368_s17] sm:$0xff] %vm379_vm0, %v4200_v25  ;;  %v4215_v33 = vadd.f32 %v4914_v60, %v4486_v6 }
 0x77d   : > { %v4209_v44 = vpop.f32.mrf.mxu0 }
 0x77e   : > { %4241 = vst.msk [vmem:[%s368_s17 + $0x18] sm:$0xff] %vm379_vm0, %v4215_v33  ;;  %v4210_v15 = vadd.f32 %v4486_v6, %v4209_v44 }
 0x77f   : > { %v4917_v59 = vpop.f32.mrf.mxu0 }
 0x780   : > { %4240 = vst.msk [vmem:[%s368_s17 + $0x10] sm:$0xff] %vm379_vm0, %v4210_v15  ;;  %v4225_v14 = vadd.f32 %v4917_v59, %v4486_v6 }
 0x781   : > { %v4219_v31 = vpop.f32.mrf.mxu0 }
 0x782   : > { %4243 = vst.msk [vmem:[%s368_s17 + $0x28] sm:$0xff] %vm379_vm0, %v4225_v14  ;;  %v4220_v41 = vadd.f32 %v4486_v6, %v4219_v31 }
 0x784   : > { %4242 = vst.msk [vmem:[%s368_s17 + $0x20] sm:$0xff] %vm379_vm0, %v4220_v41 }
 0x7b3   : > { %v4920_v28 = vpop.f32.mrf.mxu0 }
 0x7b4   : > { %v4235_v27 = vadd.f32 %v4920_v28, %v4486_v6 }
 0x7b5   : > { %v4229_v16 = vpop.f32.mrf.mxu0 }
 0x7b6   : > { %4245 = vst.msk [vmem:[%s368_s17 + $0x38] sm:$0xff] %vm379_vm0, %v4235_v27  ;;  %v4230_v26 = vadd.f32 %v4486_v6, %v4229_v16 }
 0x7b8   : > { %4244 = vst.msk [vmem:[%s368_s17 + $0x30] sm:$0xff] %vm379_vm0, %v4230_v26 }
 0x7b9   : > { %5280 = shalt.err (!%p5277_p10)
}
 0x7ba   : > { %s5281_s11 = scalar_lea.hbm %s6533_s26, 1024  ;;  %s5285_s17 = scalar_lea.hbm %s6589_s8, 2048 }
 0x7bb   : > { %p5282_p6 = scmp.ne.s32.totalorder %s6533_s26, %s5281_s11  ;;  %p5286_p3 = scmp.lt.s32.totalorder %s6533_s26, %s6589_s8 }
 0x7bc   : > { %p5287_p11 = scmp.lt.s32.totalorder %s5285_s17, %s5281_s11 }
 0x7bd   : > { %p5283_p4 = pnand %p5282_p6, %p6644_p1 }
 0x7be   : > { %p5288_p5 = por %p5287_p11, %p5286_p3 }
 0x7bf   : > { %p5284_p8 = pneg %p5283_p4 }
 0x7c1   : > { %p5289_p7 = pnand %p5288_p5, %p5284_p8 }
 0x7c3   : > { %5292 = shalt.err (!%p5289_p7)
}
 0x7c4   : > { %s5356_s19 = smov 128  }
 0x7c5   : > { %4943 = dma.vmem_to_hbm [thread:$0]  (%p6644_p1), %s6536_s16, 1024, %s6533_s26, %s4247_s9, %s5356_s19, %s5356_s19, %s5352_s20  }
 0x7c6 PF: > { %s4276_s10 = sand.u32 1, %s5327_s27   ;;  %p6645_p12 = scmp.ne.s32.totalorder %s6609_s12, 0 }
 0x7c7   : > { %p6646_p9 = scmp.ge.s32.totalorder %s5339_s30, 2  ;;  %s4277_s23 = scalar_lea.sflag [#allocation4], %s4276_s10 }
 0x7c9   : > { %p4960_p13 = pnand %p6646_p9, %p6645_p12 }
 0x7cb   : > { %p4961_p0 = pneg %p4960_p13 }
 0x7cd   : > { %5322 = dma.done.wait (%p4961_p0), %s4277_s23, 1024  }
 0x7ce   : > { %5324 = vsyncadd (%p4961_p0), %s4277_s23, 4294966272  ;;  %p23_p2 = scmp.ge.s32.totalorder %s5491_s18, 4   ;;  %s6647_s27 = smov %s5331_s28 }
 0x7cf   : > { %s6648_s28 = smov %s5335_s29  ;;  %s6649_s29 = smov %s5501_s24 }
 0x7d0   : > { %s6650_s30 = smov %s5491_s18  ;;  %25 = sbr.rel (!%p23_p2) target bundleno = 10 (0xa), region = 109 }
 0x7d5   :  { %4282 = vsyncpa [#allocation3], 1 }
 0x7d6   :  { %4284 = vsyncpa [#allocation3 + $0x1], 1 }
 0x7d7   :  { %4285 = vsyncpa [#allocation6], 1 }
 0x7d8   :  { %4286 = vsyncpa [#allocation9], 1 }
 0x7d9   :  { %4287 = vsyncpa [#allocation4], 1 }
 0x7da   :  { %4289 = vsyncpa [#allocation4 + $0x1], 1 }

</bundles_post_ra>
